<compile_context>
chip_gen: v7x
topology: tpu7x:2x2x1
jax: 0.10.0
libtpu: 0.0.40
codegen_flags: <defaults>
</compile_context>

<pallas_src>
import functools

import jax
import jax.numpy as jnp
from jax import lax
from jax.experimental import pallas as pl
from jax.experimental.pallas import tpu as pltpu


def _round_up(x, m):
    return ((x + m - 1) // m) * m


def _tiled_vmem_bytes(leading, d2, d1, itemsize):
    """Approximate Mosaic VMEM footprint of an array whose last two dims are
    (d2, d1): lanes pad to 128, sublanes to the dtype's packed tile height."""
    sublane = 8 * (4 // itemsize)
    return leading * _round_up(max(d2, 1), sublane) * _round_up(max(d1, 1), 128) * itemsize


# ---------------------------------------------------------------------------
# Pallas kernel: packed-im2col conv + bias + ReLU (one image, one O tile)
# ---------------------------------------------------------------------------
def _conv_block_kernel(x_ref, w_ref, b_ref, o_ref, patch_ref, *,
                       K, stride, Ho, Wo, patch_reuse):
    # x_ref:     (1, Hp, Wp, C)    zero-padded NHWC input, compute dtype (bf16)
    # w_ref:     (K*K*C, O_t)      im2col-packed weights, compute dtype
    # b_ref:     (1, O_t)          bias, f32
    # o_ref:     (1, M, O_t)       output tile (M = Ho*Wo), out dtype
    # patch_ref: (Ho, Wo, K*K*C)   VMEM scratch: packed im2col LHS, compute dtype
    C = x_ref.shape[-1]
    KKC = K * K * C
    M = Ho * Wo

    def build_patch():
        # K*K shifted copies into the lane-dense patch; one row slab per kh
        # bounds live ranges (K slabs instead of K*K windows).
        for kh in range(K):
            if stride == 1:
                rows = x_ref[0, pl.ds(kh, Ho), :, :]              # (Ho, Wp, C)
            for kw in range(K):
                tap = kh * K + kw
                if stride == 1:
                    win = rows[:, kw:kw + Wo, :]                  # (Ho, Wo, C)
                else:
                    win = x_ref[0, pl.ds(kh, Ho, stride=stride),
                                pl.ds(kw, Wo, stride=stride), :]
                patch_ref[:, :, tap * C:(tap + 1) * C] = win

    if patch_reuse:
        # Image block index only changes on the outer grid axis -> rebuild the
        # packed LHS only for the first O tile of each image.
        @pl.when(pl.program_id(1) == 0)
        def _():
            build_patch()
    else:
        build_patch()

    # One deep (M, K*K*C) x (K*K*C, O_t) MXU matmul per grid step, f32 accumulate.
    lhs = patch_ref[...].reshape(M, KKC)
    acc = jnp.dot(lhs, w_ref[...], preferred_element_type=jnp.float32)
    acc = acc + b_ref[...]                                        # f32 bias add
    o_ref[0] = jnp.maximum(acc, 0.0).astype(o_ref.dtype)          # f32 ReLU, store


# ---------------------------------------------------------------------------
# NHWC wrapper (hot path)
# ---------------------------------------------------------------------------
@functools.partial(
    jax.jit,
    static_argnames=("kernel_size", "stride", "padding", "compute_dtype", "out_dtype"))
def conv2d_block_forward_nhwc(x, weight, bias, *, kernel_size, stride, padding,
                              compute_dtype=jnp.bfloat16, out_dtype=jnp.bfloat16):
    """x: (N, H, W, C) NHWC; weight: (O, C, K, K) PyTorch layout; bias: (O,)."""
    N, H, W, C = x.shape
    O = weight.shape[0]
    K = kernel_size
    Hp, Wp = H + 2 * padding, W + 2 * padding
    Ho = (Hp - K) // stride + 1
    Wo = (Wp - K) // stride + 1
    M = Ho * Wo
    KKC = K * K * C

    # Lane-dense output channels.  Pad to 256 (and use 256-wide tiles) when O is
    # big enough to justify it so the v6e/v7x 256-wide MXU columns are filled.
    O_pad = _round_up(O, 256) if O > 128 else _round_up(O, 128)
    O_t = 256 if O_pad % 256 == 0 else 128
    n_ob = O_pad // O_t

    # ZeroPad2d + cast to the MXU-native compute dtype.
    xp = jnp.pad(x, ((0, 0), (padding, padding), (padding, padding), (0, 0)))
    xp = xp.astype(compute_dtype)

    # (O, C, K, K) -> (K*K*C, O_pad): row index = (kh*K + kw)*C + c, matching the
    # patch column order built in the kernel.  Padded channels get zero weights.
    w_pack = jnp.transpose(weight, (2, 3, 1, 0)).reshape(KKC, O)
    w_pack = jnp.pad(w_pack, ((0, 0), (0, O_pad - O))).astype(compute_dtype)
    b_row = jnp.pad(bias, (0, O_pad - O)).reshape(1, O_pad).astype(jnp.float32)

    isz = jnp.dtype(compute_dtype).itemsize
    osz = jnp.dtype(out_dtype).itemsize

    # ----- scoped-VMEM budget (tiled, lane-padded block footprints) -----
    need = (2 * _tiled_vmem_bytes(Hp, Wp, C, isz)       # image block (double-buffered)
            + 2 * _tiled_vmem_bytes(1, KKC, O_t, isz)   # weight block
            + 2 * _tiled_vmem_bytes(1, 1, O_t, 4)       # bias block
            + 2 * _tiled_vmem_bytes(1, M, O_t, osz)     # output block
            + _tiled_vmem_bytes(Ho, Wo, KKC, isz)       # im2col patch scratch
            + M * O_t * 4)                              # f32 matmul result
    # 2x headroom for relayout temporaries; cap at 40 MiB (v7x: 64 MiB physical
    # VMEM per TensorCore; v5e/v6e: 128 MiB).
    vmem_limit = int(min(max(2 * need + (4 << 20), 32 << 20), 40 << 20))
    # TODO(synk): feature maps whose blocks exceed this budget need an Ho-tile
    # grid axis with a (K-1)-row halo (manual pl.ANY + make_async_copy strips);
    # here the whole padded image stays resident per grid step.

    # ----- grid order: keep the bigger operand constant along the inner axis -----
    img_blk = Hp * Wp * C * isz
    wt_blk = KKC * O_t * isz
    wt_fetch_img_outer = N * n_ob if n_ob > 1 else 1
    img_fetch_wt_outer = n_ob * N if N > 1 else 1
    traffic_img_outer = N * img_blk + wt_fetch_img_outer * wt_blk
    traffic_wt_outer = n_ob * wt_blk + img_fetch_wt_outer * img_blk
    image_outer = traffic_img_outer <= traffic_wt_outer

    if image_outer:
        grid = (N, n_ob)
        x_map = lambda n, ob: (n, 0, 0, 0)
        w_map = lambda n, ob: (0, ob)
        b_map = lambda n, ob: (0, ob)
        o_map = lambda n, ob: (n, 0, ob)
        # Inner O-tile axis must stay on one core ("arbitrary"): the patch
        # scratch is rebuilt only at ob == 0 and reused for ob > 0.
        dim_sem = ("parallel", "arbitrary")
    else:
        grid = (n_ob, N)
        x_map = lambda ob, n: (n, 0, 0, 0)
        w_map = lambda ob, n: (0, ob)
        b_map = lambda ob, n: (0, ob)
        o_map = lambda ob, n: (n, 0, ob)
        dim_sem = ("parallel", "parallel")

    kernel = functools.partial(_conv_block_kernel, K=K, stride=stride,
                               Ho=Ho, Wo=Wo, patch_reuse=image_outer)

    out = pl.pallas_call(
        kernel,
        out_shape=jax.ShapeDtypeStruct((N, M, O_pad), out_dtype),
        grid_spec=pltpu.PrefetchScalarGridSpec(
            num_scalar_prefetch=0,
            grid=grid,
            in_specs=[
                pl.BlockSpec((1, Hp, Wp, C), x_map),
                pl.BlockSpec((KKC, O_t), w_map),
                pl.BlockSpec((1, O_t), b_map),
            ],
            out_specs=pl.BlockSpec((1, M, O_t), o_map),
            scratch_shapes=[pltpu.VMEM((Ho, Wo, KKC), compute_dtype)],
        ),
        compiler_params=pltpu.CompilerParams(
            dimension_semantics=dim_sem,
            vmem_limit_bytes=vmem_limit,
        ),
    )(xp, w_pack, b_row)

    # Free reshape; slice off the O padding only when it exists.
    out = out.reshape(N, Ho, Wo, O_pad)
    if O != O_pad:
        out = out[..., :O]
    return out


# ---------------------------------------------------------------------------
# PyTorch-layout (NCHW) entry point — transposes only at the API boundary.
# ---------------------------------------------------------------------------
@functools.partial(
    jax.jit,
    static_argnames=("kernel_size", "stride", "padding", "compute_dtype", "out_dtype"))
def conv2d_block_forward(x, weight, bias, *, kernel_size, stride, padding,
                         compute_dtype=jnp.bfloat16, out_dtype=jnp.bfloat16):
    """x: (N, C, H, W) -> (N, O, Ho, Wo).  Use the NHWC entry point when the
    surrounding network is channels-last to avoid these boundary transposes."""
    x_nhwc = jnp.transpose(x, (0, 2, 3, 1))
    y_nhwc = conv2d_block_forward_nhwc(
        x_nhwc, weight, bias, kernel_size=kernel_size, stride=stride,
        padding=padding, compute_dtype=compute_dtype, out_dtype=out_dtype)
    return jnp.transpose(y_nhwc, (0, 3, 1, 2))


# ---------------------------------------------------------------------------
# Demo / correctness check
# ---------------------------------------------------------------------------
if __name__ == "__main__":
    # Conv2dBlock(input_dim=4, output_dim=8, kernel_size=3, stride=1, padding=1,
    #             norm='none', activation='relu', pad_type='zero')
    N, C_in, C_out, H, W = 2, 4, 8, 16, 16
    K, stride, padding = 3, 1, 1

    key = jax.random.PRNGKey(0)
    kx, kw_, kb = jax.random.split(key, 3)
    x = jax.random.normal(kx, (N, C_in, H, W), dtype=jnp.float32)
    fan_in = C_in * K * K
    bound = 1.0 / (fan_in ** 0.5)
    weight = jax.random.uniform(kw_, (C_out, C_in, K, K),
                                minval=-bound, maxval=bound, dtype=jnp.float32)
    bias = jax.random.uniform(kb, (C_out,),
                              minval=-bound, maxval=bound, dtype=jnp.float32)

    out = conv2d_block_forward(x, weight, bias,
                               kernel_size=K, stride=stride, padding=padding)
    out = jax.block_until_ready(out)
    assert out.shape == (N, C_out, H, W)
    out_f32 = out.astype(jnp.float32)

    # Reference A: same quantization as the kernel (bf16 inputs/weights,
    # f32 accumulate + bias + ReLU, bf16 store).
    x_bf = x.astype(jnp.bfloat16).astype(jnp.float32)
    w_bf = weight.astype(jnp.bfloat16).astype(jnp.float32)
    ref = lax.conv_general_dilated(
        x_bf, w_bf, window_strides=(stride, stride),
        padding=((padding, padding), (padding, padding)),
        dimension_numbers=("NCHW", "OIHW", "NCHW"),
        precision=lax.Precision.HIGHEST)
    ref = jnp.maximum(ref + bias[None, :, None, None], 0.0)
    ref = ref.astype(jnp.bfloat16).astype(jnp.float32)
    assert jnp.allclose(out_f32, ref, atol=2e-2, rtol=2e-2), \
        float(jnp.max(jnp.abs(out_f32 - ref)))

    # Reference B: full-f32 module semantics (loose tol for bf16 compute/store).
    ref32 = lax.conv_general_dilated(
        x, weight, window_strides=(stride, stride),
        padding=((padding, padding), (padding, padding)),
        dimension_numbers=("NCHW", "OIHW", "NCHW"),
        precision=lax.Precision.HIGHEST)
    ref32 = jnp.maximum(ref32 + bias[None, :, None, None], 0.0)
    assert jnp.allclose(out_f32, ref32, atol=5e-2, rtol=5e-2), \
        float(jnp.max(jnp.abs(out_f32 - ref32)))

    print("KERNEL_OK")
</pallas_src>

<mosaic_0001>
module attributes {stable_mosaic.version = 11 : i64} {
  func.func @_conv_block_kernel(%arg0: i32, %arg1: i32, %arg2: memref<1x18x18x4xbf16, #tpu.memory_space<vmem>>, %arg3: memref<36x128xbf16, #tpu.memory_space<vmem>>, %arg4: memref<1x128xf32, #tpu.memory_space<vmem>>, %arg5: memref<1x256x128xbf16, #tpu.memory_space<vmem>>, %arg6: memref<16x16x36xbf16, #tpu.memory_space<vmem>>) attributes {dimension_semantics = [#tpu.dimension_semantics<parallel>, #tpu.dimension_semantics<arbitrary>], iteration_bounds = array<i64: 2, 1>, scalar_prefetch = 0 : i64, scratch_operands = 1 : i64, tpu.core_type = #tpu.core_type<tc>, window_params = [{transform_indices = @transform_0, window_bounds = array<i64: 1, 18, 18, 4>}, {transform_indices = @transform_1, window_bounds = array<i64: 36, 128>}, {transform_indices = @transform_2, window_bounds = array<i64: 1, 128>}, {transform_indices = @transform_3, window_bounds = array<i64: 1, 256, 128>}]} {
    %c0_i32 = arith.constant 0 : i32
    %0 = arith.cmpi eq, %arg1, %c0_i32 : i32
    %1 = arith.extui %0 : i1 to i32
    %c0_i32_0 = arith.constant 0 : i32
    %2 = arith.cmpi ne, %1, %c0_i32_0 : i32
    scf.if %2 {
      %c0_11 = arith.constant 0 : index
      %c0_12 = arith.constant 0 : index
      %c0_13 = arith.constant 0 : index
      %c0_14 = arith.constant 0 : index
      %16 = vector.load %arg2[%c0_11, %c0_12, %c0_13, %c0_14] : memref<1x18x18x4xbf16, #tpu.memory_space<vmem>>, vector<1x16x18x4xbf16>
      %17 = vector.shape_cast %16 : vector<1x16x18x4xbf16> to vector<16x18x4xbf16>
      %18 = vector.extract_strided_slice %17 {offsets = [0, 0, 0], sizes = [16, 16, 4], strides = [1, 1, 1]} : vector<16x18x4xbf16> to vector<16x16x4xbf16>
      %c0_15 = arith.constant 0 : index
      %c0_16 = arith.constant 0 : index
      %c0_17 = arith.constant 0 : index
      %19 = vector.load %arg6[%c0_15, %c0_16, %c0_17] : memref<16x16x36xbf16, #tpu.memory_space<vmem>>, vector<16x16x4xbf16>
      tpu.vector_store %arg6[%c0_15, %c0_16, %c0_17], %18 {strides = array<i32>} : memref<16x16x36xbf16, #tpu.memory_space<vmem>>, vector<16x16x4xbf16>,
      %20 = vector.extract_strided_slice %17 {offsets = [0, 1, 0], sizes = [16, 16, 4], strides = [1, 1, 1]} : vector<16x18x4xbf16> to vector<16x16x4xbf16>
      %c0_18 = arith.constant 0 : index
      %c0_19 = arith.constant 0 : index
      %c4 = arith.constant 4 : index
      %21 = vector.load %arg6[%c0_18, %c0_19, %c4] : memref<16x16x36xbf16, #tpu.memory_space<vmem>>, vector<16x16x4xbf16>
      tpu.vector_store %arg6[%c0_18, %c0_19, %c4], %20 {strides = array<i32>} : memref<16x16x36xbf16, #tpu.memory_space<vmem>>, vector<16x16x4xbf16>,
      %22 = vector.extract_strided_slice %17 {offsets = [0, 2, 0], sizes = [16, 16, 4], strides = [1, 1, 1]} : vector<16x18x4xbf16> to vector<16x16x4xbf16>
      %c0_20 = arith.constant 0 : index
      %c0_21 = arith.constant 0 : index
      %c8 = arith.constant 8 : index
      %23 = vector.load %arg6[%c0_20, %c0_21, %c8] : memref<16x16x36xbf16, #tpu.memory_space<vmem>>, vector<16x16x4xbf16>
      tpu.vector_store %arg6[%c0_20, %c0_21, %c8], %22 {strides = array<i32>} : memref<16x16x36xbf16, #tpu.memory_space<vmem>>, vector<16x16x4xbf16>,
      %c0_22 = arith.constant 0 : index
      %c1 = arith.constant 1 : index
      %c0_23 = arith.constant 0 : index
      %c0_24 = arith.constant 0 : index
      %24 = vector.load %arg2[%c0_22, %c1, %c0_23, %c0_24] : memref<1x18x18x4xbf16, #tpu.memory_space<vmem>>, vector<1x16x18x4xbf16>
      %25 = vector.shape_cast %24 : vector<1x16x18x4xbf16> to vector<16x18x4xbf16>
      %26 = vector.extract_strided_slice %25 {offsets = [0, 0, 0], sizes = [16, 16, 4], strides = [1, 1, 1]} : vector<16x18x4xbf16> to vector<16x16x4xbf16>
      %c0_25 = arith.constant 0 : index
      %c0_26 = arith.constant 0 : index
      %c12 = arith.constant 12 : index
      %27 = vector.load %arg6[%c0_25, %c0_26, %c12] : memref<16x16x36xbf16, #tpu.memory_space<vmem>>, vector<16x16x4xbf16>
      tpu.vector_store %arg6[%c0_25, %c0_26, %c12], %26 {strides = array<i32>} : memref<16x16x36xbf16, #tpu.memory_space<vmem>>, vector<16x16x4xbf16>,
      %28 = vector.extract_strided_slice %25 {offsets = [0, 1, 0], sizes = [16, 16, 4], strides = [1, 1, 1]} : vector<16x18x4xbf16> to vector<16x16x4xbf16>
      %c0_27 = arith.constant 0 : index
      %c0_28 = arith.constant 0 : index
      %c16 = arith.constant 16 : index
      %29 = vector.load %arg6[%c0_27, %c0_28, %c16] : memref<16x16x36xbf16, #tpu.memory_space<vmem>>, vector<16x16x4xbf16>
      tpu.vector_store %arg6[%c0_27, %c0_28, %c16], %28 {strides = array<i32>} : memref<16x16x36xbf16, #tpu.memory_space<vmem>>, vector<16x16x4xbf16>,
      %30 = vector.extract_strided_slice %25 {offsets = [0, 2, 0], sizes = [16, 16, 4], strides = [1, 1, 1]} : vector<16x18x4xbf16> to vector<16x16x4xbf16>
      %c0_29 = arith.constant 0 : index
      %c0_30 = arith.constant 0 : index
      %c20 = arith.constant 20 : index
      %31 = vector.load %arg6[%c0_29, %c0_30, %c20] : memref<16x16x36xbf16, #tpu.memory_space<vmem>>, vector<16x16x4xbf16>
      tpu.vector_store %arg6[%c0_29, %c0_30, %c20], %30 {strides = array<i32>} : memref<16x16x36xbf16, #tpu.memory_space<vmem>>, vector<16x16x4xbf16>,
      %c0_31 = arith.constant 0 : index
      %c2 = arith.constant 2 : index
      %c0_32 = arith.constant 0 : index
      %c0_33 = arith.constant 0 : index
      %32 = vector.load %arg2[%c0_31, %c2, %c0_32, %c0_33] : memref<1x18x18x4xbf16, #tpu.memory_space<vmem>>, vector<1x16x18x4xbf16>
      %33 = vector.shape_cast %32 : vector<1x16x18x4xbf16> to vector<16x18x4xbf16>
      %34 = vector.extract_strided_slice %33 {offsets = [0, 0, 0], sizes = [16, 16, 4], strides = [1, 1, 1]} : vector<16x18x4xbf16> to vector<16x16x4xbf16>
      %c0_34 = arith.constant 0 : index
      %c0_35 = arith.constant 0 : index
      %c24 = arith.constant 24 : index
      %35 = vector.load %arg6[%c0_34, %c0_35, %c24] : memref<16x16x36xbf16, #tpu.memory_space<vmem>>, vector<16x16x4xbf16>
      tpu.vector_store %arg6[%c0_34, %c0_35, %c24], %34 {strides = array<i32>} : memref<16x16x36xbf16, #tpu.memory_space<vmem>>, vector<16x16x4xbf16>,
      %36 = vector.extract_strided_slice %33 {offsets = [0, 1, 0], sizes = [16, 16, 4], strides = [1, 1, 1]} : vector<16x18x4xbf16> to vector<16x16x4xbf16>
      %c0_36 = arith.constant 0 : index
      %c0_37 = arith.constant 0 : index
      %c28 = arith.constant 28 : index
      %37 = vector.load %arg6[%c0_36, %c0_37, %c28] : memref<16x16x36xbf16, #tpu.memory_space<vmem>>, vector<16x16x4xbf16>
      tpu.vector_store %arg6[%c0_36, %c0_37, %c28], %36 {strides = array<i32>} : memref<16x16x36xbf16, #tpu.memory_space<vmem>>, vector<16x16x4xbf16>,
      %38 = vector.extract_strided_slice %33 {offsets = [0, 2, 0], sizes = [16, 16, 4], strides = [1, 1, 1]} : vector<16x18x4xbf16> to vector<16x16x4xbf16>
      %c0_38 = arith.constant 0 : index
      %c0_39 = arith.constant 0 : index
      %c32 = arith.constant 32 : index
      %39 = vector.load %arg6[%c0_38, %c0_39, %c32] : memref<16x16x36xbf16, #tpu.memory_space<vmem>>, vector<16x16x4xbf16>
      tpu.vector_store %arg6[%c0_38, %c0_39, %c32], %38 {strides = array<i32>} : memref<16x16x36xbf16, #tpu.memory_space<vmem>>, vector<16x16x4xbf16>,
    } else {
    }
    %c0 = arith.constant 0 : index
    %c0_1 = arith.constant 0 : index
    %c0_2 = arith.constant 0 : index
    %3 = vector.load %arg6[%c0, %c0_1, %c0_2] : memref<16x16x36xbf16, #tpu.memory_space<vmem>>, vector<16x16x36xbf16>
    %4 = vector.shape_cast %3 : vector<16x16x36xbf16> to vector<256x36xbf16>
    %c0_3 = arith.constant 0 : index
    %c0_4 = arith.constant 0 : index
    %5 = vector.load %arg3[%c0_3, %c0_4] : memref<36x128xbf16, #tpu.memory_space<vmem>>, vector<36x128xbf16>
    %cst = arith.constant dense<0.000000e+00> : vector<256x128xf32>
    %6 = tpu.matmul %4, %5, %cst {dimension_numbers = #tpu.dot_dimension_numbers<[1], [0], [0], [1], [0, 0, 1, 1], [], []>} : vector<256x36xbf16>, vector<36x128xbf16>, vector<256x128xf32> -> vector<256x128xf32>
    %c0_5 = arith.constant 0 : index
    %c0_6 = arith.constant 0 : index
    %7 = vector.load %arg4[%c0_5, %c0_6] : memref<1x128xf32, #tpu.memory_space<vmem>>, vector<1x128xf32>
    %8 = vector.broadcast %7 : vector<1x128xf32> to vector<256x128xf32>
    %9 = arith.addf %6, %8 : vector<256x128xf32>
    %cst_7 = arith.constant 0.000000e+00 : f32
    %10 = vector.broadcast %cst_7 : f32 to vector<256x128xf32>
    %11 = arith.maximumf %9, %10 : vector<256x128xf32>
    %12 = arith.truncf %11 : vector<256x128xf32> to vector<256x128xbf16>
    %c0_8 = arith.constant 0 : index
    %c0_9 = arith.constant 0 : index
    %c0_10 = arith.constant 0 : index
    %13 = vector.load %arg5[%c0_8, %c0_9, %c0_10] : memref<1x256x128xbf16, #tpu.memory_space<vmem>>, vector<1x256x128xbf16>
    %14 = vector.shape_cast %13 : vector<1x256x128xbf16> to vector<256x128xbf16>
    %15 = vector.shape_cast %12 : vector<256x128xbf16> to vector<1x256x128xbf16>
    tpu.vector_store %arg5[%c0_8, %c0_9, %c0_10], %15 {strides = array<i32>} : memref<1x256x128xbf16, #tpu.memory_space<vmem>>, vector<1x256x128xbf16>,
    return
  }
  func.func @transform_0(%arg0: i32, %arg1: i32) -> (i32, i32, i32, i32) {
    %c0_i32 = arith.constant 0 : i32
    %c0_i32_0 = arith.constant 0 : i32
    %c0_i32_1 = arith.constant 0 : i32
    %c0_i32_2 = arith.constant 0 : i32
    return %arg0, %c0_i32, %c0_i32_0, %c0_i32_1 : i32, i32, i32, i32
  }
  func.func @transform_1(%arg0: i32, %arg1: i32) -> (i32, i32) {
    %c0_i32 = arith.constant 0 : i32
    %c0_i32_0 = arith.constant 0 : i32
    return %c0_i32, %arg1 : i32, i32
  }
  func.func @transform_2(%arg0: i32, %arg1: i32) -> (i32, i32) {
    %c0_i32 = arith.constant 0 : i32
    %c0_i32_0 = arith.constant 0 : i32
    return %c0_i32, %arg1 : i32, i32
  }
  func.func @transform_3(%arg0: i32, %arg1: i32) -> (i32, i32, i32) {
    %c0_i32 = arith.constant 0 : i32
    %c0_i32_0 = arith.constant 0 : i32
    return %arg0, %c0_i32, %arg1 : i32, i32, i32
  }
}

</mosaic_0001>

<bundles_post_ra>
// kernel: conv2d_block_forward_nhwc.1
= control target key start
LH: loop header
LB: loop body
LE: loop exit
PB: predicated region body
PF: predicated region fallthrough
CT: control target
= control target key end

     0   :  { %s3219_s12 = smov 0   ;;  %s3221_s13 = smov 0   ;;  %s4246_s0 = inlined_call_operand.vmem [shape: bf16[2,18,18,4], index: 0, kind: input, shape index: {}]   ;;  %s4247_s1 = inlined_call_operand.vmem [shape: bf16[36,128], index: 1, kind: input, shape index: {}]   ;;  %s4248_s2 = inlined_call_operand.vmem [shape: f32[1,128], index: 2, kind: input, shape index: {}]   ;;  %s4249_s3 = inlined_call_operand.vmem [shape: bf16[2,256,128], index: 3, kind: output, shape index: {}]  }
   0x1   :  { %s3223_s14 = smov 0  }
   0x2 LB: > { %s25_s15 = sadd.s32 1, %s3185_s13  ;;  %p2592_p0 = scmp.ge.s32.totalorder %s3189_s14, 1  ;;  %s3189_s14 = sphi %s3223_s14, %s13_s14   ;;  %s3185_s13 = sphi %s3221_s13, %s4251_s13   ;;  %s3181_s12 = sphi %s3219_s12, %s4250_s12  }
   0x3   : > { %p27_p1 = scmp.ge.s32.totalorder %s25_s15, 2  ;;  %p168_p2 = scmp.lt.s32.totalorder %s3189_s14, 3 }
   0x5   : > { %s4253_s15 = smov (%p27_p1, %s25_s15), 0  ;;  %p169_p3 = pnand %p2592_p0, %p168_p2 }
   0x6   : > { %p202_p4 = scmp.lt.s32.totalorder (!%p169_p3), %s3181_s12, 1  ;;  %vm694_vm0 = vcmask (!%p169_p3), 1046528   ;;  %s3191_s20 = smov (!%p169_p3), 12   ;;  %vm436_vm1 = vsmask.f32 (!%p169_p3), 7424  ;;  %vm371_vm2 = vcmask (!%p169_p3), 31744  }
   0x7   : > { %172 = sbr.rel (%p169_p3) target bundleno = 617 (0x269), region = 32  ;;  %s3192_s21 = smov (!%p169_p3), 8   ;;  %vm2124_vm3 = vcmask (!%p169_p3), 1041408   ;;  %vm677_vm4 = vcmask (!%p169_p3), 64544   ;;  %vm791_vm5 = vcmask (!%p169_p3), 97344   ;;  %vm985_vm6 = vcmask (!%p169_p3), 130144  }
   0x8   : > { %s3193_s22 = smov (!%p169_p3), 4   ;;  %s3194_s23 = smov (!%p169_p3), 16   ;;  %vm1290_vm7 = vcmask (!%p169_p3), 162944   ;;  %vm1403_vm8 = vcmask (!%p169_p3), 195744   ;;  %vm1597_vm9 = vcmask (!%p169_p3), 228544   ;;  %vm1902_vm10 = vcmask (!%p169_p3), 261344  }
   0x9   : > { %s3195_s24 = smov (!%p169_p3), 20   ;;  %s3196_s25 = smov (!%p169_p3), 24   ;;  %vm2015_vm11 = vcmask (!%p169_p3), 294144   ;;  %vm2075_vm12 = vcmask (!%p169_p3), 293888  }
   0xa   : > { %s3197_s26 = smov (!%p169_p3), 28   ;;  %s3198_s27 = smov (!%p169_p3), 32  }
   0xe   : > { %s4255_s12 = smov (!%p202_p4, %s3181_s12), 1 }
   0xf   : > { %s3035_s16 = smul.u32 216, %s4255_s12  ;;  %s2842_s9 = sshll.u32 %s4255_s12, 7 }
  0x11   : > { %s3243_s19 = scalar_lea.vmem %s4246_s0, %s3035_s16  ;;  %s4195_s16 = scalar_lea.vmem %s4249_s3, %s2842_s9 }
  0x12   : > { %v3246_v0 = vld [vmem:[%s3243_s19 + $0x6c] sm:$0xff]   ;;  %v3256_v2 = vld [vmem:[%s3243_s19 + $0x60] sm:$0xff]   ;;  %v3071_v3 = vld [vmem:[%s3243_s19 + $0x68] ss:$0 sps:$4 sm:$0x11]  }
  0x13   : > { %v3249_v1 = vld [vmem:[%s3243_s19 + $0xc] sm:$0xff]   ;;  %953 = vrot.lane.b32.xlu1 %v3246_v0, %s3191_s20  ;;  %v3260_v4 = vld [vmem:[%s3243_s19] sm:$0xff]   ;;  %v1147_v5 = vshrl.u32 %v3246_v0, 16  ;;  %v719_v6 = vrot.slane %v3256_v2, 1  ;;  %v720_v7 = vrot.slane %v3071_v3, 1  ;;  %v3290_v36 = vld [vmem:[%s3243_s19 + $0x78] sm:$0xff]  }
  0x14   : > { %937 = vrot.lane.b32.xlu0 %v3249_v1, %s3191_s20  ;;  %v3073_v8 = vld [vmem:[%s3243_s19 + $0x8] ss:$0 sps:$4 sm:$0x11]   ;;  %v3266_v9 = vld [vmem:[%s3243_s19 + $0x6c] sm:$0xff]   ;;  %v695_v10 = vrot.slane %v3260_v4, 1  ;;  %v438_v22 = vshrl.u32 %v3260_v4, 16 }
  0x15   : > { %v3270_v11 = vld [vmem:[%s3243_s19 + $0xc] sm:$0xff]   ;;  %v721_v12 = vsel %vm694_vm0, %v719_v6, %v720_v7  ;;  %v696_v13 = vrot.slane %v3073_v8, 1  ;;  %v3075_v14 = vld [vmem:[%s3243_s19 + $0x74] ss:$0 sps:$4 sm:$0x11]   ;;  %v722_v15 = vrot.slane %v3266_v9, 1 }
  0x16   : > { %v698_v16 = vrot.slane %v3270_v11, 1  ;;  %v723_v18 = vrot.slane %v3075_v14, 1  ;;  %v3077_v19 = vld [vmem:[%s3243_s19 + $0x14] ss:$0 sps:$4 sm:$0x11]   ;;  %v450_v20 = vshrl.u32 %v3270_v11, 16 }
  0x17   : > { %759 = vrot.lane.b32.xlu1 %v721_v12, %s3192_s21  ;;  %v697_v17 = vsel %vm694_vm0, %v695_v10, %v696_v13  ;;  %v452_v21 = vshll.u32 %v3270_v11, 16  ;;  %v440_v23 = vshll.u32 %v3260_v4, 16  ;;  %v699_v25 = vrot.slane %v3077_v19, 1  ;;  %v3080_v44 = vld [vmem:[%s3243_s19 + $0x74] ss:$0 sps:$4 sm:$0x11]  }
  0x18   : > { %743 = vrot.lane.b32.xlu0 %v697_v17, %s3192_s21  ;;  %v724_v24 = vsel %vm694_vm0, %v722_v15, %v723_v18  ;;  %v457_v26 = vshll.u32 %v3077_v19, 16  ;;  %v445_v27 = vshll.u32 %v3073_v8, 16  ;;  %v546_v30 = vshrl.u32 %v3266_v9, 16  ;;  %v3081_v49 = vld [vmem:[%s3243_s19 + $0x14] ss:$0 sps:$4 sm:$0x11]  }
  0x19   : > { %v454_v28 = vrot.slane %v452_v21, 1  ;;  %v442_v29 = vrot.slane %v440_v23, 1  ;;  %v548_v31 = vshll.u32 %v3266_v9, 16  ;;  %v700_v32 = vsel %vm694_vm0, %v698_v16, %v699_v25  ;;  %v3302_v52 = vld [vmem:[%s3243_s19 + $0x18] sm:$0xff]   ;;  %373 = vst.msk [vmem:[#allocation2 + $0x8] sm:$0xff] %vm371_vm2, %v3270_v11  ;;  %372 = vst.msk [vmem:[#allocation2] sm:$0xff] %vm371_vm2, %v3260_v4 }
  0x1a   : > { %v459_v33 = vrot.slane %v457_v26, 1  ;;  %v447_v34 = vrot.slane %v445_v27, 1  ;;  %v553_v35 = vshll.u32 %v3075_v14, 16  ;;  %v534_v40 = vshrl.u32 %v3256_v2, 16  ;;  %380 = vst.msk [vmem:[#allocation2 + $0x40] sm:$0xff] %vm371_vm2, %v3256_v2  ;;  %381 = vst.msk [vmem:[#allocation2 + $0x48] sm:$0xff] %vm371_vm2, %v3266_v9 }
  0x1b   : > { %761 = vrot.lane.b32.xlu1 %v724_v24, %s3192_s21  ;;  %v455_v37 = vor.u32 %v454_v28, %v450_v20  ;;  %v443_v38 = vor.u32 %v442_v29, %v438_v22  ;;  %v550_v39 = vrot.slane %v548_v31, 1  ;;  %v536_v42 = vshll.u32 %v3256_v2, 16  ;;  %v3082_v58 = vld [vmem:[%s3243_s19 + $0x80] ss:$0 sps:$4 sm:$0x11]  }
  0x1c   : > { %745 = vrot.lane.b32.xlu0 %v700_v32, %s3192_s21  ;;  %v555_v41 = vrot.slane %v553_v35, 1  ;;  %v541_v43 = vshll.u32 %v3071_v3, 16  ;;  %v1149_v48 = vshll.u32 %v3246_v0, 16  ;;  %v1154_v53 = vshll.u32 %v3080_v44, 16 }
  0x1d   : > { %v460_v45 = vsel %vm436_vm1, %v455_v37, %v459_v33  ;;  %v448_v46 = vsel %vm436_vm1, %v443_v38, %v447_v34  ;;  %v551_v47 = vor.u32 %v550_v39, %v546_v30  ;;  %v538_v50 = vrot.slane %v536_v42, 1  ;;  %v3083_v62 = vld [vmem:[%s3243_s19 + $0x20] ss:$0 sps:$4 sm:$0x11]   ;;  %v3332_v30 = vld [vmem:[%s3243_s19 + $0x78] sm:$0xff]   ;;  %v3347_v38 = vld [vmem:[%s3243_s19 + $0x84] sm:$0xff]  }
  0x1e   : > { %v543_v51 = vrot.slane %v541_v43, 1  ;;  %v1151_v55 = vrot.slane %v1149_v48, 1  ;;  %v1053_v56 = vshll.u32 %v3249_v1, 16  ;;  %v1058_v57 = vshll.u32 %v3081_v49, 16 }
  0x1f   : > { %631 = vrot.lane.b32.xlu1 %v460_v45, %s3193_s22  ;;  %v556_v54 = vsel %vm436_vm1, %v551_v47, %v555_v41  ;;  %v539_v59 = vor.u32 %v538_v50, %v534_v40  ;;  %v1051_v60 = vshrl.u32 %v3249_v1, 16  ;;  %v1161_v61 = vshll.u32 %v3290_v36, 16  ;;  %v3344_v37 = vld [vmem:[%s3243_s19 + $0x80] ss:$0 sps:$4 sm:$0x11]   ;;  %v3352_v40 = vld [vmem:[%s3243_s19 + $0x24] sm:$0xff]  }
  0x20   : > { %629 = vrot.lane.b32.xlu0 %v448_v46, %s3193_s22  ;;  %v1156_v63 = vrot.slane %v1154_v53, 1  ;;  %v1055_v3 = vrot.slane %v1053_v56, 1  ;;  %v1060_v7 = vrot.slane %v1058_v57, 1  ;;  %v1159_v8 = vshrl.u32 %v3290_v36, 16 }
  0x21   : > { %v544_v6 = vsel %vm436_vm1, %v539_v59, %v543_v51  ;;  %v1065_v10 = vshll.u32 %v3302_v52, 16  ;;  %v1152_v12 = vor.u32 %v1151_v55, %v1147_v5  ;;  %v1163_v13 = vrot.slane %v1161_v61, 1  ;;  %v3366_v48 = vld [vmem:[%s3243_s19 + $0x8c] ss:$0 sps:$4 sm:$0x11]   ;;  %v3383_v59 = vld [vmem:[%s3243_s19 + $0x18] sm:$0xff]  }
  0x22   : > { %v1166_v14 = vshll.u32 %v3082_v58, 16  ;;  %v1056_v15 = vor.u32 %v1055_v3, %v1051_v60  ;;  %v1063_v16 = vshrl.u32 %v3302_v52, 16  ;;  %v1070_v18 = vshll.u32 %v3083_v62, 16  ;;  %v3373_v53 = vld [vmem:[%s3243_s19 + $0x2c] ss:$0 sps:$4 sm:$0x11]  }
  0x23   : > { %647 = vrot.lane.b32.xlu1 %v556_v54, %s3193_s22  ;;  %v1067_v17 = vrot.slane %v1065_v10, 1  ;;  %v1157_v19 = vsel %vm436_vm1, %v1152_v12, %v1156_v63  ;;  %v1164_v20 = vor.u32 %v1163_v13, %v1159_v8  ;;  %v1331_v25 = vrot.slane %v3246_v0, 1  ;;  %v3376_v54 = vld [vmem:[%s3243_s19 + $0x78] sm:$0xff]   ;;  %v3393_v8 = vld [vmem:[%s3243_s19 + $0x20] ss:$0 sps:$4 sm:$0x11]  }
  0x24   : > { %645 = vrot.lane.b32.xlu0 %v544_v6, %s3193_s22  ;;  %v1168_v21 = vrot.slane %v1166_v14, 1  ;;  %v1061_v5 = vsel %vm436_vm1, %v1056_v15, %v1060_v7  ;;  %v1072_v23 = vrot.slane %v1070_v18, 1  ;;  %v1332_v26 = vrot.slane %v3080_v44, 1  ;;  %v3390_v7 = vld [vmem:[%s3243_s19 + $0x80] ss:$0 sps:$4 sm:$0x11]  }
  0x25   : > { %v1068_v22 = vor.u32 %v1067_v17, %v1063_v16  ;;  %v1307_v28 = vrot.slane %v3249_v1, 1  ;;  %v1308_v29 = vrot.slane %v3081_v49, 1  ;;  %v1334_v32 = vrot.slane %v3290_v36, 1  ;;  %v3341_v1 = vld [vmem:[%s3243_s19 + $0x18] sm:$0xff]   ;;  %374 = vst.msk [vmem:[#allocation2 + $0x10] sm:$0xff] %vm371_vm2, %v3383_v59  ;;  %382 = vst.msk [vmem:[#allocation2 + $0x50] sm:$0xff] %vm371_vm2, %v3376_v54 }
  0x26   : > { %v1169_v24 = vsel %vm436_vm1, %v1164_v20, %v1168_v21  ;;  %v1333_v31 = vsel %vm694_vm0, %v1331_v25, %v1332_v26  ;;  %v1335_v0 = vrot.slane %v3082_v58, 1  ;;  %v1310_v34 = vrot.slane %v3302_v52, 1  ;;  %v3413_v26 = vld [vmem:[%s3243_s19 + $0x84] sm:$0xff]  }
  0x27   : > { %955 = vrot.lane.b32.xlu1 %v3290_v36, %s3191_s20  ;;  %v1073_v27 = vsel %vm436_vm1, %v1068_v22, %v1072_v23  ;;  %v1309_v33 = vsel %vm694_vm0, %v1307_v28, %v1308_v29  ;;  %v1311_v35 = vrot.slane %v3083_v62, 1  ;;  %v1761_v39 = vshll.u32 %v3332_v30, 16  ;;  %v3355_v36 = vld [vmem:[%s3243_s19 + $0x20] ss:$0 sps:$4 sm:$0x11]   ;;  %383 = vst.msk [vmem:[#allocation2 + $0x58] sm:$0xff] %vm371_vm2, %v3413_v26 }
  0x28   : > { %939 = vrot.lane.b32.xlu0 %v3302_v52, %s3191_s20  ;;  %v1336_v41 = vsel %vm694_vm0, %v1334_v32, %v1335_v0  ;;  %v1665_v43 = vshll.u32 %v3341_v1, 16  ;;  %v1759_v44 = vshrl.u32 %v3332_v30, 16  ;;  %v1766_v46 = vshll.u32 %v3344_v37, 16 }
  0x29   : > { %v1312_v42 = vsel %vm694_vm0, %v1310_v34, %v1311_v35  ;;  %v1763_v45 = vrot.slane %v1761_v39, 1  ;;  %v1670_v47 = vshll.u32 %v3355_v36, 16  ;;  %v1773_v49 = vshll.u32 %v3347_v38, 16  ;;  %v3425_v35 = vld [vmem:[%s3243_s19 + $0x8c] ss:$0 sps:$4 sm:$0x11]  }
  0x2a   : > { %v1677_v50 = vshll.u32 %v3352_v40, 16  ;;  %v1663_v51 = vshrl.u32 %v3341_v1, 16  ;;  %v1667_v52 = vrot.slane %v1665_v43, 1  ;;  %v1768_v56 = vrot.slane %v1766_v46, 1 }
  0x2b   : > { %1258 = vrot.lane.b32.xlu1 %v1157_v19, %s3194_s23  ;;  %v1764_v55 = vor.u32 %v1763_v45, %v1759_v44  ;;  %v1771_v57 = vshrl.u32 %v3347_v38, 16  ;;  %v1675_v58 = vshrl.u32 %v3352_v40, 16  ;;  %v1672_v60 = vrot.slane %v1670_v47, 1 }
  0x2c   : > { %1242 = vrot.lane.b32.xlu0 %v1061_v5, %s3194_s23  ;;  %v1775_v61 = vrot.slane %v1773_v49, 1  ;;  %v1778_v62 = vshll.u32 %v3366_v48, 16  ;;  %v1679_v63 = vrot.slane %v1677_v50, 1  ;;  %v1668_v3 = vor.u32 %v1667_v52, %v1663_v51 }
  0x2d   : > { %v1682_v6 = vshll.u32 %v3373_v53, 16  ;;  %v1769_v10 = vsel %vm436_vm1, %v1764_v55, %v1768_v56  ;;  %v560_v14 = vshll.u32 %v3376_v54, 16  ;;  %v464_v18 = vshll.u32 %v3383_v59, 16 }
  0x2e   : > { %v1776_v12 = vor.u32 %v1775_v61, %v1771_v57  ;;  %v1780_v13 = vrot.slane %v1778_v62, 1  ;;  %v1673_v15 = vsel %vm436_vm1, %v1668_v3, %v1672_v60  ;;  %v1680_v16 = vor.u32 %v1679_v63, %v1675_v58  ;;  %v3452_v61 = vld [vmem:[%s3243_s19 + $0x90] sm:$0xff]  }
  0x2f   : > { %1260 = vrot.lane.b32.xlu1 %v1169_v24, %s3194_s23  ;;  %v1684_v17 = vrot.slane %v1682_v6, 1  ;;  %v1943_v19 = vrot.slane %v3332_v30, 1  ;;  %v1944_v20 = vrot.slane %v3344_v37, 1  ;;  %v565_v21 = vshll.u32 %v3390_v7, 16  ;;  %v3458_v3 = vld [vmem:[%s3243_s19 + $0x30] sm:$0xff]   ;;  %384 = vst.msk [vmem:[#allocation2 + $0x60] sm:$0xff] %vm371_vm2, %v3452_v61 }
  0x30   : > { %1244 = vrot.lane.b32.xlu0 %v1073_v27, %s3194_s23  ;;  %v469_v5 = vshll.u32 %v3393_v8, 16  ;;  %v1781_v22 = vsel %vm436_vm1, %v1776_v12, %v1780_v13  ;;  %v1919_v23 = vrot.slane %v3341_v1, 1  ;;  %v558_v24 = vshrl.u32 %v3376_v54, 16  ;;  %v3464_v13 = vld [vmem:[%s3243_s19 + $0x9c] sm:$0xff]   ;;  %376 = vst.msk [vmem:[#allocation2 + $0x20] sm:$0xff] %vm371_vm2, %v3458_v3 }
  0x31   : > { %v562_v25 = vrot.slane %v560_v14, 1  ;;  %v1685_v27 = vsel %vm436_vm1, %v1680_v16, %v1684_v17  ;;  %v1920_v28 = vrot.slane %v3355_v36, 1  ;;  %v462_v29 = vshrl.u32 %v3383_v59, 16  ;;  %v3430_v36 = vld [vmem:[%s3243_s19 + $0x2c] ss:$0 sps:$4 sm:$0x11]  }
  0x32   : > { %v567_v32 = vrot.slane %v565_v21, 1  ;;  %v471_v0 = vrot.slane %v469_v5, 1  ;;  %v1947_v43 = vrot.slane %v3366_v48, 1  ;;  %v1922_v44 = vrot.slane %v3352_v40, 1  ;;  %v3467_v14 = vld [vmem:[%s3243_s19 + $0x3c] sm:$0xff]   ;;  %385 = vst.msk [vmem:[#allocation2 + $0x68] sm:$0xff] %vm371_vm2, %v3464_v13 }
  0x33   : > { %1371 = vrot.lane.b32.xlu1 %v1333_v31, %s3195_s24  ;;  %v3419_v31 = vld [vmem:[%s3243_s19 + $0x24] sm:$0xff]   ;;  %v563_v34 = vor.u32 %v562_v25, %v558_v24  ;;  %v1921_v37 = vsel %vm694_vm0, %v1919_v23, %v1920_v28  ;;  %v1923_v45 = vrot.slane %v3373_v53, 1  ;;  %v570_v47 = vshrl.u32 %v3413_v26, 16  ;;  %377 = vst.msk [vmem:[#allocation2 + $0x28] sm:$0xff] %vm371_vm2, %v3467_v14  ;;  %v3511_v17 = vld [vmem:[%s3243_s19 + $0x90] sm:$0xff]  }
  0x34   : > { %1355 = vrot.lane.b32.xlu0 %v1309_v33, %s3195_s24  ;;  %v1945_v33 = vsel %vm694_vm0, %v1943_v19, %v1944_v20  ;;  %v577_v50 = vshll.u32 %v3425_v35, 16  ;;  %v725_v60 = vrot.slane %v3376_v54, 1  ;;  %v726_v63 = vrot.slane %v3390_v7, 1  ;;  %375 = vst.msk [vmem:[#allocation2 + $0x18] sm:$0xff] %vm371_vm2, %v3419_v31  ;;  %v3503_v54 = vld [vmem:[%s3243_s19 + $0x24] sm:$0xff]   ;;  %v3519_v5 = vld [vmem:[%s3243_s19 + $0x30] sm:$0xff]  }
  0x35   : > { %v568_v46 = vsel %vm436_vm1, %v563_v34, %v567_v32  ;;  %v1924_v56 = vsel %vm694_vm0, %v1922_v44, %v1923_v45  ;;  %v702_v12 = vrot.slane %v3393_v8, 1  ;;  %v728_v4 = vrot.slane %v3413_v26, 1  ;;  %v3104_v8 = vld [vmem:[%s3243_s19 + $0x8c] ss:$0 sps:$4 sm:$0x11]  }
  0x36   : > { %v579_v55 = vrot.slane %v577_v50, 1  ;;  %v727_v2 = vsel %vm694_vm0, %v725_v60, %v726_v63  ;;  %v729_v9 = vrot.slane %v3425_v35, 1  ;;  %v704_v11 = vrot.slane %v3419_v31, 1  ;;  %v3105_v19 = vld [vmem:[%s3243_s19 + $0x2c] ss:$0 sps:$4 sm:$0x11]  }
  0x37   : > { %1373 = vrot.lane.b32.xlu1 %v1336_v41, %s3195_s24  ;;  %v476_v41 = vshll.u32 %v3419_v31, 16  ;;  %v705_v7 = vrot.slane %v3430_v36, 1  ;;  %v1077_v20 = vshll.u32 %v3503_v54, 16  ;;  %v1075_v23 = vshrl.u32 %v3503_v54, 16  ;;  %v3139_v63 = vld [vmem:[%s4247_s1 + $0x8] sm:$0xff]  }
  0x38   : > { %1357 = vrot.lane.b32.xlu0 %v1312_v42, %s3195_s24  ;;  %v1946_v42 = vrot.slane %v3347_v38, 1  ;;  %v3106_v25 = vld [vmem:[%s3243_s19 + $0x98] ss:$0 sps:$4 sm:$0x11]   ;;  %v1183_v32 = vshrl.u32 %v3511_v17, 16 }
  0x39   : > { %v478_v52 = vrot.slane %v476_v41, 1  ;;  %v706_v21 = vsel %vm694_vm0, %v704_v11, %v705_v7  ;;  %v1079_v28 = vrot.slane %v1077_v20, 1  ;;  %v3588_v11 = vld [vmem:[%s3243_s19 + $0x9c] sm:$0xff]   ;;  %v3604_v20 = vld [vmem:[%s3243_s19 + $0xb4] sm:$0xff]  }
  0x3a   : > { %v1948_v48 = vsel %vm694_vm0, %v1946_v42, %v1947_v43  ;;  %387 = vst.msk [vmem:[#allocation2 + $0x78] sm:$0xff] %vm371_vm2, %v3604_v20 }
  0x3b   : > { %1565 = vrot.lane.b32.xlu1 %v3332_v30, %s3196_s25  ;;  %v466_v30 = vrot.slane %v464_v18, 1  ;;  %v730_v18 = vsel %vm694_vm0, %v728_v4, %v729_v9  ;;  %v3581_v4 = vld [vmem:[%s3243_s19 + $0x38] ss:$0 sps:$4 sm:$0x11]   ;;  %v3584_v9 = vld [vmem:[%s3243_s19 + $0x48] sm:$0xff]  }
  0x3c   : > { %1549 = vrot.lane.b32.xlu0 %v3341_v1, %s3196_s25  ;;  %v572_v1 = vshll.u32 %v3413_v26, 16  ;;  %v1178_v26 = vshll.u32 %v3104_v8, 16  ;;  %378 = vst.msk [vmem:[#allocation2 + $0x30] sm:$0xff] %vm371_vm2, %v3584_v9 }
  0x3d   : > { %v467_v39 = vor.u32 %v466_v30, %v462_v29  ;;  %v1082_v29 = vshll.u32 %v3105_v19, 16  ;;  %v3528_v30 = vld [vmem:[%s3243_s19 + $0x38] ss:$0 sps:$4 sm:$0x11]  }
  0x3e   : > { %v574_v49 = vrot.slane %v572_v1, 1  ;;  %v1180_v34 = vrot.slane %v1178_v26, 1  ;;  %v1190_v1 = vshll.u32 %v3106_v25, 16  ;;  %v1094_v41 = vshll.u32 %v3528_v30, 16 }
  0x3f   : > { %1567 = vrot.lane.b32.xlu1 %v3347_v38, %s3196_s25  ;;  %v472_v51 = vsel %vm436_vm1, %v467_v39, %v471_v0  ;;  %v474_v38 = vshrl.u32 %v3419_v31, 16  ;;  %v1089_v31 = vshll.u32 %v3519_v5, 16  ;;  %v1087_v0 = vshrl.u32 %v3519_v5, 16  ;;  %v3621_v26 = vld [vmem:[%s3243_s19 + $0x44] ss:$0 sps:$4 sm:$0x11]  }
  0x40   : > { %1551 = vrot.lane.b32.xlu0 %v3352_v40, %s3196_s25  ;;  %v481_v40 = vshll.u32 %v3430_v36, 16  ;;  %v575_v53 = vor.u32 %v574_v49, %v570_v47  ;;  %v1084_v39 = vrot.slane %v1082_v29, 1  ;;  %v1192_v44 = vrot.slane %v1190_v1, 1 }
  0x41   : > { %v479_v57 = vor.u32 %v478_v52, %v474_v38  ;;  %v1091_v36 = vrot.slane %v1089_v31, 1  ;;  %v1096_v47 = vrot.slane %v1094_v41, 1  ;;  %v3549_v38 = vld [vmem:[%s3243_s19 + $0x90] sm:$0xff]   ;;  %v3136_v52 = vld [vmem:[%s4247_s1] sm:$0xff]   ;;  %v1317_v60 = vrot.slane %v3528_v30, 1 }
  0x42   : > { %v483_v58 = vrot.slane %v481_v40, 1  ;;  %v580_v62 = vsel %vm436_vm1, %v575_v53, %v579_v55  ;;  %v1314_v53 = vrot.slane %v3105_v19, 1  ;;  %2989 = vmatprep.subr.bf16.mxu0 %v3136_v52  ;;  %3027 = vmatprep.subr.bf16.mxu1 %v3136_v52  ;;  %v1340_v55 = vrot.slane %v3511_v17, 1  ;;  %v3142_v19 = vld [vmem:[%s4247_s1 + $0x10] ss:$0 sps:$4 sm:$0x33]  }
  0x43   : > { %1870 = vrot.lane.b32.xlu1 %v1769_v10, %s3197_s26  ;;  %v701_v10 = vrot.slane %v3383_v59, 1  ;;  %2990 = vmatpush3.bf16.msra.mxu0 %v3136_v52  ;;  %v1706_v1 = vshll.u32 %v3621_v26, 16 }
  0x44   : > { %1854 = vrot.lane.b32.xlu0 %v1673_v15, %s3197_s26  ;;  %v484_v6 = vsel %vm436_vm1, %v479_v57, %v483_v58  ;;  %v3470_v15 = vld [vmem:[%s3243_s19 + $0x84] sm:$0xff]   ;;  %v1316_v58 = vrot.slane %v3519_v5, 1  ;;  %3030 = vmatpush3.bf16.msra.mxu1 %v3136_v52 }
  0x45   : > { %v703_v59 = vsel %vm694_vm0, %v701_v10, %v702_v12  ;;  %v1173_v16 = vshll.u32 %v3470_v15, 16  ;;  %v1337_v50 = vrot.slane %v3470_v15, 1  ;;  %v3573_v12 = vld [vmem:[%s3243_s19 + $0x98] ss:$0 sps:$4 sm:$0x11]   ;;  %2991 = vmatprep.subr.bf16.mxu0 %v3139_v63  ;;  %3028 = vmatprep.subr.bf16.mxu1 %v3139_v63 }
  0x47   : > { %1872 = vrot.lane.b32.xlu1 %v1781_v22, %s3197_s26  ;;  %v1171_v22 = vshrl.u32 %v3470_v15, 16  ;;  %v1175_v24 = vrot.slane %v1173_v16, 1  ;;  %2992 = vmatpush3.bf16.msra.mxu0 %v3139_v63  ;;  %v1318_v16 = vsel %vm694_vm0, %v1316_v58, %v1317_v60 }
  0x48   : > { %1856 = vrot.lane.b32.xlu0 %v1685_v27, %s3197_s26  ;;  %v1185_v27 = vshll.u32 %v3511_v17, 16  ;;  %3031 = vmatpush3.bf16.msra.mxu1 %v3139_v63 }
  0x49   : > { %3033 = vmatprep.subr.msk.bf16.mxu0 %vm2124_vm3, %v3142_v19  ;;  %3034 = vmatprep.subr.msk.bf16.mxu1 %vm2124_vm3, %v3142_v19 }
  0x4a   : > { %v1187_v35 = vrot.slane %v1185_v27, 1 }
  0x4b   : > { %1983 = vrot.lane.b32.xlu1 %v1945_v33, %s3198_s27  ;;  %v1176_v33 = vor.u32 %v1175_v24, %v1171_v22  ;;  %v1694_v22 = vshll.u32 %v3581_v4, 16 }
  0x4c   : > { %1967 = vrot.lane.b32.xlu0 %v1921_v37, %s3198_s27  ;;  %v1080_v37 = vor.u32 %v1079_v28, %v1075_v23  ;;  %v1188_v43 = vor.u32 %v1187_v35, %v1183_v32  ;;  %v2126_v23 = vsel %vm2124_vm3, %v3142_v19, 0  ;;  %v1795_v28 = vshrl.u32 %v3588_v11, 16 }
  0x4d   : > { %v1181_v42 = vsel %vm436_vm1, %v1176_v33, %v1180_v34  ;;  %2994 = vmatpush3.bf16.msra.mxu0 %v2126_v23  ;;  %3032 = vmatpush3.bf16.msra.mxu1 %v2126_v23  ;;  %v1696_v34 = vrot.slane %v1694_v22, 1  ;;  %v1952_v19 = vrot.slane %v3588_v11, 1 }
  0x4e   : > { %v1085_v45 = vsel %vm436_vm1, %v1080_v37, %v1084_v39  ;;  %v1193_v49 = vsel %vm436_vm1, %v1188_v43, %v1192_v44  ;;  %v3638_v37 = vld [vmem:[%s3243_s19 + $0x98] ss:$0 sps:$4 sm:$0x11]   ;;  %v584_v39 = vshll.u32 %v3452_v61, 16  ;;  %v488_v44 = vshll.u32 %v3458_v3, 16 }
  0x4f   : > { %649 = vrot.lane.b32.xlu1 %v568_v46, %s3193_s22  ;;  %v1092_v46 = vor.u32 %v1091_v36, %v1087_v0  ;;  %v3645_v43 = vld [vmem:[%s3243_s19 + $0x38] ss:$0 sps:$4 sm:$0x11]  }
  0x50   : > { %633 = vrot.lane.b32.xlu0 %v472_v51, %s3193_s22  ;;  %v1338_v51 = vrot.slane %v3104_v8, 1  ;;  %v490_v58 = vrot.slane %v488_v44, 1  ;;  %v493_v60 = vshll.u32 %v3645_v43, 16  ;;  %v732_v44 = vrot.slane %v3638_v37, 1 }
  0x51   : > { %v1097_v40 = vsel %vm436_vm1, %v1092_v46, %v1096_v47  ;;  %v1708_v47 = vrot.slane %v1706_v1, 1 }
  0x52   : > { %v1339_v57 = vsel %vm694_vm0, %v1337_v50, %v1338_v51  ;;  %v1949_v50 = vrot.slane %v3549_v38, 1  ;;  %v1950_v51 = vrot.slane %v3573_v12, 1 }
  0x53   : > { %1985 = vrot.lane.b32.xlu1 %v1948_v48, %s3198_s27  ;;  %v1313_v48 = vrot.slane %v3503_v54, 1 }
  0x54   : > { %1969 = vrot.lane.b32.xlu0 %v1924_v56, %s3198_s27  ;;  %v1341_v56 = vrot.slane %v3106_v25, 1  ;;  %v1797_v25 = vshll.u32 %v3588_v11, 16 }
  0x55   : > { %v1315_v10 = vsel %vm694_vm0, %v1313_v48, %v1314_v53  ;;  %v582_v48 = vshrl.u32 %v3452_v61, 16  ;;  %v586_v53 = vrot.slane %v584_v39, 1 }
  0x56   : > { %v1799_v32 = vrot.slane %v1797_v25, 1  ;;  %v594_v25 = vshrl.u32 %v3464_v13, 16 }
  0x57   : > { %651 = vrot.lane.b32.xlu1 %v580_v62, %s3193_s22  ;;  %v3563_v62 = vld [vmem:[%s3243_s19 + $0x30] sm:$0xff]  }
  0x58   : > { %635 = vrot.lane.b32.xlu0 %v484_v6, %s3193_s22  ;;  %v3569_v6 = vld [vmem:[%s3243_s19 + $0xa8] sm:$0xff]   ;;  %v1687_v7 = vshrl.u32 %v3563_v62, 16  ;;  %v1689_v8 = vshll.u32 %v3563_v62, 16  ;;  %v1800_v41 = vor.u32 %v1799_v32, %v1795_v28  ;;  %v1925_v52 = vrot.slane %v3563_v62, 1 }
  0x59   : > { %386 = vst.msk [vmem:[#allocation2 + $0x70] sm:$0xff] %vm371_vm2, %v3569_v6 }
  0x5a   : > { %v1691_v24 = vrot.slane %v1689_v8, 1  ;;  %v495_v8 = vrot.slane %v493_v60, 1  ;;  %v3738_v60 = vld [vmem:[%s3243_s19 + $0x48] sm:$0xff]  }
  0x5b   : > { %763 = vrot.lane.b32.xlu1 %v727_v2, %s3192_s21  ;;  %v1342_v2 = vsel %vm694_vm0, %v1340_v55, %v1341_v56  ;;  %v589_v55 = vshll.u32 %v3638_v37, 16  ;;  %v486_v56 = vshrl.u32 %v3458_v3, 16 }
  0x5c   : > { %747 = vrot.lane.b32.xlu0 %v703_v59, %s3192_s21  ;;  %v1783_v59 = vshrl.u32 %v3549_v38, 16  ;;  %v1692_v33 = vor.u32 %v1691_v24, %v1687_v7  ;;  %v1929_v24 = vrot.slane %v3621_v26, 1 }
  0x5d   : > { %v591_v63 = vrot.slane %v589_v55, 1  ;;  %v491_v7 = vor.u32 %v490_v58, %v486_v56  ;;  %v3722_v55 = vld [vmem:[%s3243_s19 + $0x3c] sm:$0xff]   ;;  %v3728_v56 = vld [vmem:[%s3243_s19 + $0xa4] ss:$0 sps:$4 sm:$0x11]  }
  0x5f   : > { %765 = vrot.lane.b32.xlu1 %v730_v18, %s3192_s21  ;;  %v1790_v18 = vshll.u32 %v3573_v12, 16  ;;  %v1951_v12 = vsel %vm694_vm0, %v1949_v50, %v1950_v51  ;;  %v708_v50 = vrot.slane %v3645_v43, 1  ;;  %v3714_v43 = vld [vmem:[%s3243_s19 + $0x9c] sm:$0xff]  }
  0x60   : > { %749 = vrot.lane.b32.xlu0 %v706_v21, %s3192_s21  ;;  %v3607_v21 = vld [vmem:[%s3243_s19 + $0xa4] ss:$0 sps:$4 sm:$0x11]  }
  0x61   : > { %v1792_v31 = vrot.slane %v1790_v18, 1  ;;  %v1802_v0 = vshll.u32 %v3607_v21, 16  ;;  %v1953_v22 = vrot.slane %v3607_v21, 1 }
  0x63   : > { %957 = vrot.lane.b32.xlu1 %v3470_v15, %s3191_s20  ;;  %v1785_v15 = vshll.u32 %v3549_v38, 16  ;;  %v1954_v26 = vsel %vm694_vm0, %v1952_v19, %v1953_v22  ;;  %v1113_v19 = vshll.u32 %v3738_v60, 16 }
  0x64   : > { %941 = vrot.lane.b32.xlu0 %v3503_v54, %s3191_s20  ;;  %v3591_v54 = vld [vmem:[%s3243_s19 + $0x3c] sm:$0xff]  }
  0x65   : > { %v1701_v27 = vshll.u32 %v3591_v54, 16  ;;  %v1699_v29 = vshrl.u32 %v3591_v54, 16  ;;  %v1928_v23 = vrot.slane %v3591_v54, 1 }
  0x67   : > { %959 = vrot.lane.b32.xlu1 %v3511_v17, %s3191_s20  ;;  %v1787_v17 = vrot.slane %v1785_v15, 1  ;;  %v1703_v35 = vrot.slane %v1701_v27, 1  ;;  %v587_v15 = vor.u32 %v586_v53, %v582_v48  ;;  %v710_v48 = vrot.slane %v3467_v14, 1 }
  0x68   : > { %943 = vrot.lane.b32.xlu0 %v3519_v5, %s3191_s20  ;;  %v3610_v5 = vld [vmem:[%s3243_s19 + $0x54] sm:$0xff]  }
  0x69   : > { %379 = vst.msk [vmem:[#allocation2 + $0x38] sm:$0xff] %vm371_vm2, %v3610_v5  ;;  %v1788_v30 = vor.u32 %v1787_v17, %v1783_v59  ;;  %v1704_v46 = vor.u32 %v1703_v35, %v1699_v29  ;;  %v500_v17 = vshll.u32 %v3467_v14, 16  ;;  %v592_v28 = vsel %vm436_vm1, %v587_v15, %v591_v63 }
  0x6a   : > { %v1930_v35 = vsel %vm694_vm0, %v1928_v23, %v1929_v24  ;;  %v1101_v63 = vshll.u32 %v3722_v55, 16  ;;  %v1202_v15 = vshll.u32 %v3728_v56, 16 }
  0x6b   : > { %1262 = vrot.lane.b32.xlu1 %v1181_v42, %s3194_s23  ;;  %v1793_v36 = vsel %vm436_vm1, %v1788_v30, %v1792_v31  ;;  %v1804_v42 = vrot.slane %v1802_v0, 1  ;;  %v496_v31 = vsel %vm436_vm1, %v491_v7, %v495_v8  ;;  %v502_v32 = vrot.slane %v500_v17, 1 }
  0x6c   : > { %1246 = vrot.lane.b32.xlu0 %v1085_v45, %s3194_s23  ;;  %v1697_v45 = vsel %vm436_vm1, %v1692_v33, %v1696_v34  ;;  %v1204_v23 = vrot.slane %v1202_v15, 1 }
  0x6f   : > { %1264 = vrot.lane.b32.xlu1 %v1193_v49, %s3194_s23 }
  0x70   : > { %1248 = vrot.lane.b32.xlu0 %v1097_v40, %s3194_s23  ;;  %v1926_v40 = vrot.slane %v3581_v4, 1  ;;  %v596_v4 = vshll.u32 %v3464_v13, 16 }
  0x72   : > { %v1927_v59 = vsel %vm694_vm0, %v1925_v52, %v1926_v40  ;;  %v598_v29 = vrot.slane %v596_v4, 1  ;;  %v1099_v4 = vshrl.u32 %v3722_v55, 16 }
  0x73   : > { %1375 = vrot.lane.b32.xlu1 %v1339_v57, %s3195_s24 }
  0x74   : > { %1359 = vrot.lane.b32.xlu0 %v1315_v10, %s3195_s24  ;;  %v599_v0 = vor.u32 %v598_v29, %v594_v25  ;;  %v1111_v29 = vshrl.u32 %v3738_v60, 16 }
  0x77   : > { %1377 = vrot.lane.b32.xlu1 %v1342_v2, %s3195_s24  ;;  %v3667_v2 = vld [vmem:[%s3243_s19 + $0xa4] ss:$0 sps:$4 sm:$0x11]  }
  0x78   : > { %1361 = vrot.lane.b32.xlu0 %v1318_v16, %s3195_s24  ;;  %v3672_v16 = vld [vmem:[%s3243_s19 + $0x44] ss:$0 sps:$4 sm:$0x11]   ;;  %v601_v30 = vshll.u32 %v3667_v2, 16  ;;  %v735_v37 = vrot.slane %v3667_v2, 1 }
  0x79   : > { %v505_v21 = vshll.u32 %v3672_v16, 16  ;;  %v711_v53 = vrot.slane %v3672_v16, 1  ;;  %v1103_v16 = vrot.slane %v1101_v63, 1 }
  0x7a   : > { %v603_v33 = vrot.slane %v601_v30, 1 }
  0x7b   : > { %1569 = vrot.lane.b32.xlu1 %v3549_v38, %s3196_s25  ;;  %v1805_v38 = vsel %vm436_vm1, %v1800_v41, %v1804_v42  ;;  %v507_v39 = vrot.slane %v505_v21, 1  ;;  %v731_v42 = vrot.slane %v3452_v61, 1  ;;  %v712_v58 = vsel %vm694_vm0, %v710_v48, %v711_v53 }
  0x7c   : > { %1553 = vrot.lane.b32.xlu0 %v3563_v62, %s3196_s25  ;;  %v1709_v62 = vsel %vm436_vm1, %v1704_v46, %v1708_v47  ;;  %v604_v41 = vsel %vm436_vm1, %v599_v0, %v603_v33  ;;  %v707_v47 = vrot.slane %v3458_v3, 1  ;;  %v734_v3 = vrot.slane %v3464_v13, 1 }
  0x7d   : > { %v733_v61 = vsel %vm694_vm0, %v731_v42, %v732_v44  ;;  %v1343_v42 = vrot.slane %v3714_v43, 1  ;;  %v1344_v44 = vrot.slane %v3728_v56, 1  ;;  %v1322_v48 = vrot.slane %v3738_v60, 1  ;;  %v3808_v56 = vld [vmem:[%s3243_s19 + $0xb0] ss:$0 sps:$4 sm:$0x11]  }
  0x7e   : > { %v709_v40 = vsel %vm694_vm0, %v707_v47, %v708_v50  ;;  %v1319_v47 = vrot.slane %v3722_v55, 1  ;;  %v1814_v15 = vshll.u32 %v3808_v56, 16 }
  0x7f   : > { %1571 = vrot.lane.b32.xlu1 %v3588_v11, %s3196_s25  ;;  %v498_v11 = vshrl.u32 %v3467_v14, 16  ;;  %v3733_v14 = vld [vmem:[%s3243_s19 + $0xa8] sm:$0xff]  }
  0x80   : > { %1555 = vrot.lane.b32.xlu0 %v3591_v54, %s3196_s25  ;;  %v1209_v7 = vshll.u32 %v3733_v14, 16  ;;  %v1207_v24 = vshrl.u32 %v3733_v14, 16 }
  0x81   : > { %v503_v1 = vor.u32 %v502_v32, %v498_v11  ;;  %v1104_v11 = vor.u32 %v1103_v16, %v1099_v4  ;;  %v1115_v32 = vrot.slane %v1113_v19, 1 }
  0x83   : > { %1874 = vrot.lane.b32.xlu1 %v1793_v36, %s3197_s26  ;;  %v508_v46 = vsel %vm436_vm1, %v503_v1, %v507_v39  ;;  %v1116_v1 = vor.u32 %v1115_v32, %v1111_v29 }
  0x84   : > { %1858 = vrot.lane.b32.xlu0 %v1697_v45, %s3197_s26 }
  0x85   : > { %v3649_v49 = vpop.permute.xlu1 %953 }
  0x86   : > { %v938_v57 = vpop.permute.xlu0 %937 }
  0x87   : > { %1876 = vrot.lane.b32.xlu1 %v1805_v38, %s3197_s26 }
  0x88   : > { %1860 = vrot.lane.b32.xlu0 %v1709_v62, %s3197_s26  ;;  %v3741_v62 = vld [vmem:[%s3243_s19 + $0x44] ss:$0 sps:$4 sm:$0x11]  }
  0x89   : > { %v760_v10 = vpop.permute.xlu1 %759  ;;  %v1106_v17 = vshll.u32 %v3741_v62, 16  ;;  %v1320_v50 = vrot.slane %v3741_v62, 1  ;;  %v3821_v62 = vld [vmem:[%s3243_s19 + $0x50] ss:$0 sps:$4 sm:$0x11]  }
  0x8a   : > { %v744_v18 = vpop.permute.xlu0 %743 }
  0x8b   : > { %1987 = vrot.lane.b32.xlu1 %v1951_v12, %s3198_s27  ;;  %v1195_v12 = vshrl.u32 %v3714_v43, 16 }
  0x8c   : > { %1971 = vrot.lane.b32.xlu0 %v1927_v59, %s3198_s27  ;;  %v3752_v59 = vld [vmem:[%s3243_s19 + $0xb0] ss:$0 sps:$4 sm:$0x11]  }
  0x8d   : > { %v762_v27 = vpop.permute.xlu1 %761 }
  0x8e   : > { %v746_v54 = vpop.permute.xlu0 %745 }
  0x8f   : > { %653 = vrot.lane.b32.xlu1 %v592_v28, %s3193_s22  ;;  %v1214_v28 = vshll.u32 %v3752_v59, 16 }
  0x90   : > { %637 = vrot.lane.b32.xlu0 %v496_v31, %s3193_s22  ;;  %v1108_v31 = vrot.slane %v1106_v17, 1  ;;  %v1718_v17 = vshll.u32 %v3821_v62, 16 }
  0x91   : > { %v632_v34 = vpop.permute.xlu1 %631  ;;  %v1216_v33 = vrot.slane %v1214_v28, 1 }
  0x92   : > { %679 = vst.msk [vmem:[#allocation2 + $0x8] sm:$0xff] %vm677_vm4, %v632_v34  ;;  %v630_v36 = vpop.permute.xlu0 %629 }
  0x93   : > { %678 = vst.msk [vmem:[#allocation2] sm:$0xff] %vm677_vm4, %v630_v36  ;;  %1989 = vrot.lane.b32.xlu1 %v1954_v26, %s3198_s27 }
  0x94   : > { %793 = vst.msk [vmem:[#allocation2 + $0x8] sm:$0xff] %vm791_vm5, %v746_v54  ;;  %792 = vst.msk [vmem:[#allocation2] sm:$0xff] %vm791_vm5, %v744_v18  ;;  %1973 = vrot.lane.b32.xlu0 %v1930_v35, %s3198_s27  ;;  %v3757_v18 = vld [vmem:[%s3243_s19 + $0x50] ss:$0 sps:$4 sm:$0x11]   ;;  %v1109_v35 = vsel %vm436_vm1, %v1104_v11, %v1108_v31  ;;  %v1720_v31 = vrot.slane %v1718_v17, 1 }
  0x95   : > { %v648_v45 = vpop.permute.xlu1 %647  ;;  %986 = vst.msk [vmem:[#allocation2] sm:$0xff] %vm985_vm6, %v938_v57  ;;  %v1197_v57 = vshll.u32 %v3714_v43, 16  ;;  %v1118_v21 = vshll.u32 %v3757_v18, 16  ;;  %v1323_v53 = vrot.slane %v3757_v18, 1 }
  0x96   : > { %687 = vst.msk [vmem:[#allocation2 + $0x48] sm:$0xff] %vm677_vm4, %v648_v45  ;;  %v646_v51 = vpop.permute.xlu0 %645  ;;  %v3837_v18 = vld [vmem:[%s3243_s19 + $0x5c] ss:$0 sps:$4 sm:$0x11]  }
  0x97   : > { %801 = vst.msk [vmem:[#allocation2 + $0x48] sm:$0xff] %vm791_vm5, %v762_v27  ;;  %655 = vrot.lane.b32.xlu1 %v604_v41, %s3193_s22  ;;  %v1199_v2 = vrot.slane %v1197_v57, 1  ;;  %v1211_v27 = vrot.slane %v1209_v7, 1  ;;  %v1120_v39 = vrot.slane %v1118_v21, 1  ;;  %v1730_v21 = vshll.u32 %v3837_v18, 16 }
  0x98   : > { %686 = vst.msk [vmem:[#allocation2 + $0x40] sm:$0xff] %vm677_vm4, %v646_v51  ;;  %639 = vrot.lane.b32.xlu0 %v508_v46, %s3193_s22 }
  0x99   : > { %800 = vst.msk [vmem:[#allocation2 + $0x40] sm:$0xff] %vm791_vm5, %v760_v10  ;;  %v956_v52 = vpop.permute.xlu1 %955  ;;  %v1200_v25 = vor.u32 %v1199_v2, %v1195_v12  ;;  %v1212_v0 = vor.u32 %v1211_v27, %v1207_v24  ;;  %v1121_v46 = vsel %vm436_vm1, %v1116_v1, %v1120_v39 }
  0x9a   : > { %994 = vst.msk [vmem:[#allocation2 + $0x40] sm:$0xff] %vm985_vm6, %v3649_v49  ;;  %995 = vst.msk [vmem:[#allocation2 + $0x48] sm:$0xff] %vm985_vm6, %v956_v52  ;;  %v940_v13 = vpop.permute.xlu0 %939  ;;  %v736_v49 = vsel %vm694_vm0, %v734_v3, %v735_v37  ;;  %v1346_v3 = vrot.slane %v3733_v14, 1  ;;  %v1347_v37 = vrot.slane %v3752_v59, 1 }
  0x9b   : > { %987 = vst.msk [vmem:[#allocation2 + $0x8] sm:$0xff] %vm985_vm6, %v940_v13  ;;  %767 = vrot.lane.b32.xlu1 %v733_v61, %s3192_s21  ;;  %v1205_v26 = vsel %vm436_vm1, %v1200_v25, %v1204_v23  ;;  %v1217_v41 = vsel %vm436_vm1, %v1212_v0, %v1216_v33  ;;  %v1345_v61 = vsel %vm694_vm0, %v1343_v42, %v1344_v44  ;;  %v3832_v59 = vld [vmem:[%s3243_s19 + $0xbc] ss:$0 sps:$4 sm:$0x11]   ;;  %v1816_v23 = vrot.slane %v1814_v15, 1 }
  0x9c   : > { %751 = vrot.lane.b32.xlu0 %v709_v40, %s3192_s21  ;;  %v1321_v40 = vsel %vm694_vm0, %v1319_v47, %v1320_v50  ;;  %v1826_v28 = vshll.u32 %v3832_v59, 16  ;;  %v3863_v42 = vld [vmem:[%s3243_s19 + $0x50] ss:$0 sps:$4 sm:$0x11]   ;;  %v512_v44 = vshll.u32 %v3584_v9, 16  ;;  %v1956_v47 = vrot.slane %v3808_v56, 1 }
  0x9d   : > { %v1259_v38 = vpop.permute.xlu1 %1258  ;;  %v1959_v17 = vrot.slane %v3832_v59, 1 }
  0x9e   : > { %1299 = vst.msk [vmem:[#allocation2 + $0x40] sm:$0xff] %vm1290_vm7, %v1259_v38  ;;  %v1243_v10 = vpop.permute.xlu0 %1242  ;;  %v1828_v33 = vrot.slane %v1826_v28, 1 }
  0x9f   : > { %1291 = vst.msk [vmem:[#allocation2] sm:$0xff] %vm1290_vm7, %v1243_v10  ;;  %769 = vrot.lane.b32.xlu1 %v736_v49, %s3192_s21  ;;  %v1348_v49 = vsel %vm694_vm0, %v1346_v3, %v1347_v37  ;;  %v606_v3 = vshrl.u32 %v3569_v6, 16 }
  0xa0   : > { %753 = vrot.lane.b32.xlu0 %v712_v58, %s3192_s21  ;;  %v1324_v58 = vsel %vm694_vm0, %v1322_v48, %v1323_v53  ;;  %v510_v53 = vshrl.u32 %v3584_v9, 16 }
  0xa1   : > { %v1261_v8 = vpop.permute.xlu1 %1260 }
  0xa2   : > { %1300 = vst.msk [vmem:[#allocation2 + $0x48] sm:$0xff] %vm1290_vm7, %v1261_v8  ;;  %v1245_v22 = vpop.permute.xlu0 %1244 }
  0xa3   : > { %1292 = vst.msk [vmem:[#allocation2 + $0x8] sm:$0xff] %vm1290_vm7, %v1245_v22  ;;  %961 = vrot.lane.b32.xlu1 %v3714_v43, %s3191_s20  ;;  %v3796_v43 = vld [vmem:[%s3243_s19 + $0xa8] sm:$0xff]  }
  0xa4   : > { %945 = vrot.lane.b32.xlu0 %v3722_v55, %s3191_s20  ;;  %v3802_v55 = vld [vmem:[%s3243_s19 + $0x48] sm:$0xff]   ;;  %v1809_v57 = vshll.u32 %v3796_v43, 16  ;;  %v1807_v12 = vshrl.u32 %v3796_v43, 16 }
  0xa5   : > { %v1372_v30 = vpop.permute.xlu1 %1371  ;;  %v1713_v63 = vshll.u32 %v3802_v55, 16  ;;  %v1711_v4 = vshrl.u32 %v3802_v55, 16  ;;  %v1931_v50 = vrot.slane %v3802_v55, 1 }
  0xa6   : > { %1412 = vst.msk [vmem:[#allocation2 + $0x40] sm:$0xff] %vm1403_vm8, %v1372_v30  ;;  %v1356_v54 = vpop.permute.xlu0 %1355  ;;  %v1811_v2 = vrot.slane %v1809_v57, 1 }
  0xa7   : > { %1404 = vst.msk [vmem:[#allocation2] sm:$0xff] %vm1403_vm8, %v1356_v54  ;;  %963 = vrot.lane.b32.xlu1 %v3733_v14, %s3191_s20  ;;  %v3813_v14 = vld [vmem:[%s3243_s19 + $0xb4] sm:$0xff]   ;;  %v1715_v16 = vrot.slane %v1713_v63, 1  ;;  %v620_v63 = vshll.u32 %v3604_v20, 16 }
  0xa8   : > { %947 = vrot.lane.b32.xlu0 %v3738_v60, %s3191_s20  ;;  %v3818_v60 = vld [vmem:[%s3243_s19 + $0x54] sm:$0xff]   ;;  %v1821_v7 = vshll.u32 %v3813_v14, 16  ;;  %v1819_v24 = vshrl.u32 %v3813_v14, 16  ;;  %v1812_v25 = vor.u32 %v1811_v2, %v1807_v12 }
  0xa9   : > { %v1374_v34 = vpop.permute.xlu1 %1373  ;;  %v1725_v19 = vshll.u32 %v3818_v60, 16  ;;  %v1723_v29 = vshrl.u32 %v3818_v60, 16  ;;  %v1716_v11 = vor.u32 %v1715_v16, %v1711_v4  ;;  %v3893_v4 = vld [vmem:[%s3243_s19 + $0x5c] ss:$0 sps:$4 sm:$0x11]   ;;  %v1958_v16 = vrot.slane %v3813_v14, 1 }
  0xaa   : > { %1413 = vst.msk [vmem:[#allocation2 + $0x48] sm:$0xff] %vm1403_vm8, %v1374_v34  ;;  %v1358_v36 = vpop.permute.xlu0 %1357  ;;  %v1823_v27 = vrot.slane %v1821_v7, 1  ;;  %v3858_v34 = vld [vmem:[%s3243_s19 + $0xb0] ss:$0 sps:$4 sm:$0x11]   ;;  %v524_v7 = vshll.u32 %v3610_v5, 16 }
  0xab   : > { %1405 = vst.msk [vmem:[#allocation2 + $0x8] sm:$0xff] %vm1403_vm8, %v1358_v36  ;;  %1266 = vrot.lane.b32.xlu1 %v1205_v26, %s3194_s23  ;;  %v1727_v32 = vrot.slane %v1725_v19, 1  ;;  %v1817_v26 = vsel %vm436_vm1, %v1812_v25, %v1816_v23  ;;  %v1721_v39 = vsel %vm436_vm1, %v1716_v11, %v1720_v31  ;;  %v1934_v19 = vrot.slane %v3818_v60, 1 }
  0xac   : > { %1250 = vrot.lane.b32.xlu0 %v1109_v35, %s3194_s23  ;;  %v1824_v0 = vor.u32 %v1823_v27, %v1819_v24  ;;  %v608_v35 = vshll.u32 %v3569_v6, 16  ;;  %v618_v24 = vshrl.u32 %v3604_v20, 16  ;;  %v622_v25 = vrot.slane %v620_v63, 1  ;;  %v3972_v63 = vld [vmem:[%s3243_s19 + $0xc8] ss:$0 sps:$4 sm:$0x11]  }
  0xad   : > { %v1566_v45 = vpop.permute.xlu1 %1565  ;;  %v1728_v36 = vor.u32 %v1727_v32, %v1723_v29  ;;  %v526_v59 = vrot.slane %v524_v7, 1  ;;  %v1960_v31 = vsel %vm694_vm0, %v1958_v16, %v1959_v17 }
  0xae   : > { %1606 = vst.msk [vmem:[#allocation2 + $0x40] sm:$0xff] %vm1597_vm9, %v1566_v45  ;;  %v1550_v51 = vpop.permute.xlu0 %1549  ;;  %v610_v37 = vrot.slane %v608_v35, 1  ;;  %v623_v32 = vor.u32 %v622_v25, %v618_v24 }
  0xaf   : > { %1598 = vst.msk [vmem:[#allocation2] sm:$0xff] %vm1597_vm9, %v1550_v51  ;;  %1268 = vrot.lane.b32.xlu1 %v1217_v41, %s3194_s23  ;;  %v1732_v41 = vrot.slane %v1730_v21, 1  ;;  %v1932_v51 = vrot.slane %v3821_v62, 1  ;;  %v3888_v62 = vld [vmem:[%s3243_s19 + $0xbc] ss:$0 sps:$4 sm:$0x11]  }
  0xb0   : > { %1252 = vrot.lane.b32.xlu0 %v1121_v46, %s3194_s23  ;;  %v1955_v46 = vrot.slane %v3796_v43, 1  ;;  %v625_v27 = vshll.u32 %v3888_v62, 16 }
  0xb1   : > { %v1568_v52 = vpop.permute.xlu1 %1567  ;;  %v1933_v12 = vsel %vm694_vm0, %v1931_v50, %v1932_v51  ;;  %v741_v50 = vrot.slane %v3888_v62, 1 }
  0xb2   : > { %1607 = vst.msk [vmem:[#allocation2 + $0x48] sm:$0xff] %vm1597_vm9, %v1568_v52  ;;  %v1552_v13 = vpop.permute.xlu0 %1551  ;;  %v613_v52 = vshll.u32 %v3858_v34, 16  ;;  %v1957_v57 = vsel %vm694_vm0, %v1955_v46, %v1956_v47  ;;  %v627_v21 = vrot.slane %v625_v27, 1  ;;  %v714_v46 = vrot.slane %v3863_v42, 1 }
  0xb3   : > { %1599 = vst.msk [vmem:[#allocation2 + $0x8] sm:$0xff] %vm1597_vm9, %v1552_v13  ;;  %1379 = vrot.lane.b32.xlu1 %v1345_v61, %s3195_s24  ;;  %v1829_v61 = vsel %vm436_vm1, %v1824_v0, %v1828_v33  ;;  %v514_v13 = vrot.slane %v512_v44, 1 }
  0xb4   : > { %1363 = vrot.lane.b32.xlu0 %v1321_v40, %s3195_s24 }
  0xb5   : > { %v1871_v38 = vpop.permute.xlu1 %1870  ;;  %v515_v15 = vor.u32 %v514_v13, %v510_v53  ;;  %v3958_v13 = vld [vmem:[%s3243_s19 + $0x60] sm:$0xff]  }
  0xb6   : > { %1911 = vst.msk [vmem:[#allocation2 + $0x40] sm:$0xff] %vm1902_vm10, %v1871_v38  ;;  %v1855_v10 = vpop.permute.xlu0 %1854  ;;  %v611_v38 = vor.u32 %v610_v37, %v606_v3  ;;  %v717_v3 = vrot.slane %v3893_v4, 1  ;;  %v3942_v37 = vld [vmem:[%s3243_s19 + $0x54] sm:$0xff]   ;;  %v1137_v7 = vshll.u32 %v3958_v13, 16  ;;  %v1135_v24 = vshrl.u32 %v3958_v13, 16 }
  0xb7   : > { %1903 = vst.msk [vmem:[#allocation2] sm:$0xff] %vm1902_vm10, %v1855_v10  ;;  %1381 = vrot.lane.b32.xlu1 %v1348_v49, %s3195_s24  ;;  %v1123_v62 = vshrl.u32 %v3942_v37, 16 }
  0xb8   : > { %1365 = vrot.lane.b32.xlu0 %v1324_v58, %s3195_s24  ;;  %v615_v58 = vrot.slane %v613_v52, 1 }
  0xb9   : > { %v1873_v8 = vpop.permute.xlu1 %1872 }
  0xba   : > { %1912 = vst.msk [vmem:[#allocation2 + $0x48] sm:$0xff] %vm1902_vm10, %v1873_v8  ;;  %v1857_v22 = vpop.permute.xlu0 %1856  ;;  %v616_v23 = vsel %vm436_vm1, %v611_v38, %v615_v58 }
  0xbb   : > { %1904 = vst.msk [vmem:[#allocation2 + $0x8] sm:$0xff] %vm1902_vm10, %v1857_v22  ;;  %1573 = vrot.lane.b32.xlu1 %v3796_v43, %s3196_s25  ;;  %v1733_v43 = vsel %vm436_vm1, %v1728_v36, %v1732_v41  ;;  %v1935_v22 = vrot.slane %v3837_v18, 1  ;;  %v738_v36 = vrot.slane %v3858_v34, 1  ;;  %v740_v34 = vrot.slane %v3604_v20, 1 }
  0xbc   : > { %1557 = vrot.lane.b32.xlu0 %v3802_v55, %s3196_s25  ;;  %v517_v55 = vshll.u32 %v3863_v42, 16  ;;  %v3948_v20 = vld [vmem:[%s3243_s19 + $0xbc] ss:$0 sps:$4 sm:$0x11]  }
  0xbd   : > { %v1984_v30 = vpop.permute.xlu1 %1983  ;;  %v1226_v38 = vshll.u32 %v3948_v20, 16 }
  0xbe   : > { %2024 = vst.msk [vmem:[#allocation2 + $0x40] sm:$0xff] %vm2015_vm11, %v1984_v30  ;;  %v1968_v54 = vpop.permute.xlu0 %1967  ;;  %v519_v2 = vrot.slane %v517_v55, 1  ;;  %v3961_v55 = vld [vmem:[%s3243_s19 + $0x5c] ss:$0 sps:$4 sm:$0x11]  }
  0xbf   : > { %2016 = vst.msk [vmem:[#allocation2] sm:$0xff] %vm2015_vm11, %v1968_v54  ;;  %1575 = vrot.lane.b32.xlu1 %v3813_v14, %s3196_s25  ;;  %v522_v14 = vshrl.u32 %v3610_v5, 16  ;;  %v1228_v16 = vrot.slane %v1226_v38, 1 }
  0xc0   : > { %1559 = vrot.lane.b32.xlu0 %v3818_v60, %s3196_s25  ;;  %v520_v30 = vsel %vm436_vm1, %v515_v15, %v519_v2  ;;  %v529_v60 = vshll.u32 %v3893_v4, 16  ;;  %v1130_v2 = vshll.u32 %v3961_v55, 16  ;;  %v3977_v4 = vld [vmem:[%s3243_s19 + $0x68] ss:$0 sps:$4 sm:$0x11]  }
  0xc1   : > { %v650_v1 = vpop.permute.xlu1 %649  ;;  %v527_v0 = vor.u32 %v526_v59, %v522_v14 }
  0xc2   : > { %688 = vst.msk [vmem:[#allocation2 + $0x50] sm:$0xff] %vm677_vm4, %v650_v1  ;;  %v634_v45 = vpop.permute.xlu0 %633  ;;  %v531_v33 = vrot.slane %v529_v60, 1  ;;  %v628_v1 = vsel %vm436_vm1, %v623_v32, %v627_v21 }
  0xc3   : > { %680 = vst.msk [vmem:[#allocation2 + $0x10] sm:$0xff] %vm677_vm4, %v634_v45  ;;  %1878 = vrot.lane.b32.xlu1 %v1817_v26, %s3197_s26  ;;  %v1936_v26 = vsel %vm694_vm0, %v1934_v19, %v1935_v22  ;;  %v713_v45 = vrot.slane %v3584_v9, 1  ;;  %v3936_v9 = vld [vmem:[%s3243_s19 + $0xb4] sm:$0xff]  }
  0xc4   : > { %1862 = vrot.lane.b32.xlu0 %v1721_v39, %s3197_s26  ;;  %v737_v39 = vrot.slane %v3569_v6, 1  ;;  %v532_v44 = vsel %vm436_vm1, %v527_v0, %v531_v33  ;;  %v1349_v0 = vrot.slane %v3936_v9, 1  ;;  %v1350_v33 = vrot.slane %v3948_v20, 1 }
  0xc5   : > { %v1986_v40 = vpop.permute.xlu1 %1985  ;;  %v2040_v48 = vld [vmem:[#allocation2 + $0x40] sm:$0xff]  ;;  %v715_v51 = vsel %vm694_vm0, %v713_v45, %v714_v46 }
  0xc6   : > { %2025 = vst.msk [vmem:[#allocation2 + $0x48] sm:$0xff] %vm2015_vm11, %v1986_v40  ;;  %v1970_v56 = vpop.permute.xlu0 %1969  ;;  %v2032_v49 = vld [vmem:[#allocation2] sm:$0xff]  ;;  %3011 = vmatprep.mubr.msk.bf16.mxu1 %vm2075_vm12, %v2040_v48  ;;  %v739_v6 = vsel %vm694_vm0, %v737_v39, %v738_v36  ;;  %v742_v40 = vsel %vm694_vm0, %v740_v34, %v741_v50  ;;  %v1325_v39 = vrot.slane %v3942_v37, 1  ;;  %v1326_v36 = vrot.slane %v3961_v55, 1 }
  0xc7   : > { %2017 = vst.msk [vmem:[#allocation2 + $0x8] sm:$0xff] %vm2015_vm11, %v1970_v56  ;;  %2995 = vmatprep.mubr.msk.bf16.mxu0 %vm2075_vm12, %v2032_v49  ;;  %1880 = vrot.lane.b32.xlu1 %v1829_v61, %s3197_s26  ;;  %v716_v61 = vrot.slane %v3610_v5, 1  ;;  %v3953_v48 = vld [vmem:[%s3243_s19 + $0xc0] sm:$0xff]   ;;  %v1221_v5 = vshll.u32 %v3936_v9, 16  ;;  %v1125_v56 = vshll.u32 %v3942_v37, 16  ;;  %v1351_v45 = vsel %vm694_vm0, %v1349_v0, %v1350_v33 }
  0xc8   : > { %1864 = vrot.lane.b32.xlu0 %v1733_v43, %s3197_s26  ;;  %v1231_v17 = vshrl.u32 %v3953_v48, 16  ;;  %v1352_v46 = vrot.slane %v3953_v48, 1  ;;  %v1327_v34 = vsel %vm694_vm0, %v1325_v39, %v1326_v36  ;;  %v1328_v50 = vrot.slane %v3958_v13, 1 }
  0xc9   : > { %v652_v10 = vpop.permute.xlu1 %651  ;;  %v718_v53 = vsel %vm694_vm0, %v716_v61, %v717_v3  ;;  %v1223_v58 = vrot.slane %v1221_v5, 1  ;;  %v1127_v15 = vrot.slane %v1125_v56, 1  ;;  %v4041_v5 = vld [vmem:[%s3243_s19 + $0x68] ss:$0 sps:$4 sm:$0x11]  }
  0xca   : > { %689 = vst.msk [vmem:[#allocation2 + $0x58] sm:$0xff] %vm677_vm4, %v652_v10  ;;  %v636_v8 = vpop.permute.xlu0 %635  ;;  %v1233_v10 = vshll.u32 %v3953_v48, 16 }
  0xcb   : > { %681 = vst.msk [vmem:[#allocation2 + $0x18] sm:$0xff] %vm677_vm4, %v636_v8  ;;  %1991 = vrot.lane.b32.xlu1 %v1957_v57, %s3198_s27  ;;  %v1219_v57 = vshrl.u32 %v3936_v9, 16  ;;  %v1128_v27 = vor.u32 %v1127_v15, %v1123_v62 }
  0xcc   : > { %1975 = vrot.lane.b32.xlu0 %v1933_v12, %s3198_s27  ;;  %v1235_v22 = vrot.slane %v1233_v10, 1  ;;  %v4057_v10 = vld [vmem:[%s3243_s19 + $0x74] ss:$0 sps:$4 sm:$0x11]  }
  0xcd   : > { %v764_v28 = vpop.permute.xlu1 %763  ;;  %v2041_v29 = vld [vmem:[#allocation2 + $0x48] sm:$0xff]  ;;  %v1224_v19 = vor.u32 %v1223_v58, %v1219_v57  ;;  %v4052_v57 = vld [vmem:[%s3243_s19 + $0xd4] ss:$0 sps:$4 sm:$0x11]  }
  0xce   : > { %802 = vst.msk [vmem:[#allocation2 + $0x50] sm:$0xff] %vm791_vm5, %v764_v28  ;;  %v748_v18 = vpop.permute.xlu0 %747  ;;  %v2033_v11 = vld [vmem:[#allocation2 + $0x8] sm:$0xff]  ;;  %3012 = vmatmul.mubr.msk.bf16.vlgmr.msra.gmra.mrb[0].mxu1 %vm2075_vm12, %v2041_v29  ;;  %v1132_v28 = vrot.slane %v1130_v2, 1  ;;  %v1139_v29 = vrot.slane %v1137_v7, 1  ;;  %v1236_v60 = vor.u32 %v1235_v22, %v1231_v17 }
  0xcf   : > { %794 = vst.msk [vmem:[#allocation2 + $0x10] sm:$0xff] %vm791_vm5, %v748_v18  ;;  %2996 = vmatmul.mubr.msk.bf16.vlgmr.msra.gmra.mrb[0].mxu0 %vm2075_vm12, %v2033_v11  ;;  %657 = vrot.lane.b32.xlu1 %v616_v23, %s3193_s22  ;;  %v1238_v23 = vshll.u32 %v3972_v63, 16  ;;  %v1229_v59 = vsel %vm436_vm1, %v1224_v19, %v1228_v16  ;;  %v1850_v16 = vshll.u32 %v4052_v57, 16 }
  0xd0   : > { %641 = vrot.lane.b32.xlu0 %v520_v30, %s3193_s22  ;;  %v1142_v30 = vshll.u32 %v3977_v4, 16  ;;  %v1140_v32 = vor.u32 %v1139_v29, %v1135_v24 }
  0xd1   : > { %v766_v54 = vpop.permute.xlu1 %765  ;;  %v1240_v18 = vrot.slane %v1238_v23, 1 }
  0xd2   : > { %803 = vst.msk [vmem:[#allocation2 + $0x58] sm:$0xff] %vm791_vm5, %v766_v54  ;;  %v750_v35 = vpop.permute.xlu0 %749  ;;  %v1144_v21 = vrot.slane %v1142_v30, 1  ;;  %v1852_v30 = vrot.slane %v1850_v16, 1 }
  0xd3   : > { %795 = vst.msk [vmem:[#allocation2 + $0x18] sm:$0xff] %vm791_vm5, %v750_v35  ;;  %1993 = vrot.lane.b32.xlu1 %v1960_v31, %s3198_s27  ;;  %v1133_v31 = vsel %vm436_vm1, %v1128_v27, %v1132_v28 }
  0xd4   : > { %1977 = vrot.lane.b32.xlu0 %v1936_v26, %s3198_s27  ;;  %v1241_v26 = vsel %vm436_vm1, %v1236_v60, %v1240_v18 }
  0xd5   : > { %v958_v41 = vpop.permute.xlu1 %957 }
  0xd6   : > { %996 = vst.msk [vmem:[#allocation2 + $0x50] sm:$0xff] %vm985_vm6, %v958_v41  ;;  %v942_v47 = vpop.permute.xlu0 %941 }
  0xd7   : > { %988 = vst.msk [vmem:[#allocation2 + $0x10] sm:$0xff] %vm985_vm6, %v942_v47  ;;  %659 = vrot.lane.b32.xlu1 %v628_v1, %s3193_s22  ;;  %v1145_v1 = vsel %vm436_vm1, %v1140_v32, %v1144_v21  ;;  %v1353_v47 = vrot.slane %v3972_v63, 1  ;;  %v1742_v63 = vshll.u32 %v4041_v5, 16 }
  0xd8   : > { %643 = vrot.lane.b32.xlu0 %v532_v44, %s3193_s22  ;;  %v4012_v44 = vld [vmem:[%s3243_s19 + $0xc0] sm:$0xff]  }
  0xd9   : > { %v960_v42 = vpop.permute.xlu1 %959  ;;  %v1833_v61 = vshll.u32 %v4012_v44, 16  ;;  %v1354_v3 = vsel %vm694_vm0, %v1352_v46, %v1353_v47  ;;  %v1744_v23 = vrot.slane %v1742_v63, 1  ;;  %v1961_v32 = vrot.slane %v4012_v44, 1 }
  0xda   : > { %997 = vst.msk [vmem:[#allocation2 + $0x58] sm:$0xff] %vm985_vm6, %v960_v42  ;;  %v944_v52 = vpop.permute.xlu0 %943  ;;  %v4022_v42 = vld [vmem:[%s3243_s19 + $0x60] sm:$0xff]  }
  0xdb   : > { %989 = vst.msk [vmem:[#allocation2 + $0x18] sm:$0xff] %vm985_vm6, %v944_v52  ;;  %771 = vrot.lane.b32.xlu1 %v739_v6, %s3192_s21  ;;  %v4034_v52 = vld [vmem:[%s3243_s19 + $0xc8] ss:$0 sps:$4 sm:$0x11]   ;;  %v1835_v55 = vrot.slane %v1833_v61, 1  ;;  %v1937_v33 = vrot.slane %v4022_v42, 1 }
  0xdc   : > { %755 = vrot.lane.b32.xlu0 %v715_v51, %s3192_s21  ;;  %v1838_v56 = vshll.u32 %v4034_v52, 16  ;;  %v1962_v21 = vrot.slane %v4034_v52, 1 }
  0xdd   : > { %v1263_v43 = vpop.permute.xlu1 %1262 }
  0xde   : > { %1301 = vst.msk [vmem:[#allocation2 + $0x50] sm:$0xff] %vm1290_vm7, %v1263_v43  ;;  %v1247_v49 = vpop.permute.xlu0 %1246  ;;  %v1737_v43 = vshll.u32 %v4022_v42, 16  ;;  %v1840_v7 = vrot.slane %v1838_v56, 1  ;;  %v1963_v36 = vsel %vm694_vm0, %v1961_v32, %v1962_v21 }
  0xdf   : > { %1293 = vst.msk [vmem:[#allocation2 + $0x10] sm:$0xff] %vm1290_vm7, %v1247_v49  ;;  %773 = vrot.lane.b32.xlu1 %v742_v40, %s3192_s21  ;;  %v1735_v49 = vshrl.u32 %v4022_v42, 16 }
  0xe0   : > { %757 = vrot.lane.b32.xlu0 %v718_v53, %s3192_s21  ;;  %v1739_v62 = vrot.slane %v1737_v43, 1 }
  0xe1   : > { %v1265_v12 = vpop.permute.xlu1 %1264 }
  0xe2   : > { %1302 = vst.msk [vmem:[#allocation2 + $0x58] sm:$0xff] %vm1290_vm7, %v1265_v12  ;;  %v1249_v8 = vpop.permute.xlu0 %1248  ;;  %v1740_v22 = vor.u32 %v1739_v62, %v1735_v49 }
  0xe3   : > { %1294 = vst.msk [vmem:[#allocation2 + $0x18] sm:$0xff] %vm1290_vm7, %v1249_v8  ;;  %965 = vrot.lane.b32.xlu1 %v3936_v9, %s3191_s20  ;;  %v1329_v9 = vrot.slane %v3977_v4, 1 }
  0xe4   : > { %949 = vrot.lane.b32.xlu0 %v3942_v37, %s3191_s20  ;;  %v4031_v37 = vld [vmem:[%s3243_s19 + $0xcc] sm:$0xff]  }
  0xe5   : > { %v1376_v25 = vpop.permute.xlu1 %1375  ;;  %v1330_v40 = vsel %vm694_vm0, %v1328_v50, %v1329_v9  ;;  %v1845_v38 = vshll.u32 %v4031_v37, 16  ;;  %v1843_v4 = vshrl.u32 %v4031_v37, 16 }
  0xe6   : > { %1414 = vst.msk [vmem:[#allocation2 + $0x50] sm:$0xff] %vm1403_vm8, %v1376_v25  ;;  %v1360_v14 = vpop.permute.xlu0 %1359  ;;  %v1754_v25 = vshll.u32 %v4057_v10, 16 }
  0xe7   : > { %1406 = vst.msk [vmem:[#allocation2 + $0x10] sm:$0xff] %vm1403_vm8, %v1360_v14  ;;  %967 = vrot.lane.b32.xlu1 %v3953_v48, %s3191_s20  ;;  %v4038_v48 = vld [vmem:[%s3243_s19 + $0x6c] sm:$0xff]   ;;  %v1847_v8 = vrot.slane %v1845_v38, 1 }
  0xe8   : > { %951 = vrot.lane.b32.xlu0 %v3958_v13, %s3191_s20  ;;  %v1831_v13 = vshrl.u32 %v4012_v44, 16  ;;  %v1749_v12 = vshll.u32 %v4038_v48, 16  ;;  %v1747_v17 = vshrl.u32 %v4038_v48, 16  ;;  %v1756_v18 = vrot.slane %v1754_v25, 1 }
  0xe9   : > { %v1378_v11 = vpop.permute.xlu1 %1377  ;;  %v1848_v29 = vor.u32 %v1847_v8, %v1843_v4  ;;  %v1940_v47 = vrot.slane %v4038_v48, 1 }
  0xea   : > { %1415 = vst.msk [vmem:[#allocation2 + $0x58] sm:$0xff] %vm1403_vm8, %v1378_v11  ;;  %v1362_v54 = vpop.permute.xlu0 %1361  ;;  %v1836_v2 = vor.u32 %v1835_v55, %v1831_v13  ;;  %v1751_v24 = vrot.slane %v1749_v12, 1 }
  0xeb   : > { %1407 = vst.msk [vmem:[#allocation2 + $0x18] sm:$0xff] %vm1403_vm8, %v1362_v54  ;;  %1270 = vrot.lane.b32.xlu1 %v1229_v59, %s3194_s23  ;;  %v1745_v59 = vsel %vm436_vm1, %v1740_v22, %v1744_v23 }
  0xec   : > { %1254 = vrot.lane.b32.xlu0 %v1133_v31, %s3194_s23  ;;  %v1841_v28 = vsel %vm436_vm1, %v1836_v2, %v1840_v7  ;;  %v1752_v60 = vor.u32 %v1751_v24, %v1747_v17  ;;  %v1853_v31 = vsel %vm436_vm1, %v1848_v29, %v1852_v30 }
  0xed   : > { %v1570_v35 = vpop.permute.xlu1 %1569 }
  0xee   : > { %1608 = vst.msk [vmem:[#allocation2 + $0x50] sm:$0xff] %vm1597_vm9, %v1570_v35  ;;  %v1554_v41 = vpop.permute.xlu0 %1553  ;;  %v1757_v0 = vsel %vm436_vm1, %v1752_v60, %v1756_v18  ;;  %v1938_v35 = vrot.slane %v4041_v5, 1 }
  0xef   : > { %1600 = vst.msk [vmem:[#allocation2 + $0x10] sm:$0xff] %vm1597_vm9, %v1554_v41  ;;  %1272 = vrot.lane.b32.xlu1 %v1241_v26, %s3194_s23  ;;  %v1964_v41 = vrot.slane %v4031_v37, 1 }
  0xf0   : > { %1256 = vrot.lane.b32.xlu0 %v1145_v1, %s3194_s23  ;;  %v1939_v46 = vsel %vm694_vm0, %v1937_v33, %v1938_v35 }
  0xf1   : > { %v1572_v6 = vpop.permute.xlu1 %1571 }
  0xf2   : > { %1609 = vst.msk [vmem:[#allocation2 + $0x58] sm:$0xff] %vm1597_vm9, %v1572_v6  ;;  %v1556_v51 = vpop.permute.xlu0 %1555  ;;  %v1941_v6 = vrot.slane %v4057_v10, 1 }
  0xf3   : > { %1601 = vst.msk [vmem:[#allocation2 + $0x18] sm:$0xff] %vm1597_vm9, %v1556_v51  ;;  %1383 = vrot.lane.b32.xlu1 %v1351_v45, %s3195_s24 }
  0xf4   : > { %1367 = vrot.lane.b32.xlu0 %v1327_v34, %s3195_s24  ;;  %v1942_v51 = vsel %vm694_vm0, %v1940_v47, %v1941_v6 }
  0xf5   : > { %v1875_v20 = vpop.permute.xlu1 %1874 }
  0xf6   : > { %1913 = vst.msk [vmem:[#allocation2 + $0x50] sm:$0xff] %vm1902_vm10, %v1875_v20  ;;  %v1859_v53 = vpop.permute.xlu0 %1858 }
  0xf7   : > { %1905 = vst.msk [vmem:[#allocation2 + $0x10] sm:$0xff] %vm1902_vm10, %v1859_v53  ;;  %1385 = vrot.lane.b32.xlu1 %v1354_v3, %s3195_s24 }
  0xf8   : > { %1369 = vrot.lane.b32.xlu0 %v1330_v40, %s3195_s24 }
  0xf9   : > { %v1877_v58 = vpop.permute.xlu1 %1876 }
  0xfa   : > { %1914 = vst.msk [vmem:[#allocation2 + $0x58] sm:$0xff] %vm1902_vm10, %v1877_v58  ;;  %v1861_v15 = vpop.permute.xlu0 %1860 }
  0xfb   : > { %1906 = vst.msk [vmem:[#allocation2 + $0x18] sm:$0xff] %vm1902_vm10, %v1861_v15  ;;  %1577 = vrot.lane.b32.xlu1 %v4012_v44, %s3196_s25  ;;  %v1965_v44 = vrot.slane %v4052_v57, 1 }
  0xfc   : > { %1561 = vrot.lane.b32.xlu0 %v4022_v42, %s3196_s25 }
  0xfd   : > { %v1988_v19 = vpop.permute.xlu1 %1987  ;;  %v1966_v50 = vsel %vm694_vm0, %v1964_v41, %v1965_v44 }
  0xfe   : > { %2026 = vst.msk [vmem:[#allocation2 + $0x50] sm:$0xff] %vm2015_vm11, %v1988_v19  ;;  %v1972_v27 = vpop.permute.xlu0 %1971 }
  0xff   : > { %2018 = vst.msk [vmem:[#allocation2 + $0x10] sm:$0xff] %vm2015_vm11, %v1972_v27  ;;  %1579 = vrot.lane.b32.xlu1 %v4031_v37, %s3196_s25 }
 0x100   : > { %1563 = vrot.lane.b32.xlu0 %v4038_v48, %s3196_s25 }
 0x101   : > { %v654_v14 = vpop.permute.xlu1 %653 }
 0x102   : > { %690 = vst.msk [vmem:[#allocation2 + $0x60] sm:$0xff] %vm677_vm4, %v654_v14  ;;  %v638_v11 = vpop.permute.xlu0 %637 }
 0x103   : > { %682 = vst.msk [vmem:[#allocation2 + $0x20] sm:$0xff] %vm677_vm4, %v638_v11  ;;  %1882 = vrot.lane.b32.xlu1 %v1841_v28, %s3197_s26 }
 0x104   : > { %1866 = vrot.lane.b32.xlu0 %v1745_v59, %s3197_s26 }
 0x105   : > { %v1990_v54 = vpop.permute.xlu1 %1989  ;;  %v2042_v26 = vld [vmem:[#allocation2 + $0x50] sm:$0xff] }
 0x106   : > { %2027 = vst.msk [vmem:[#allocation2 + $0x58] sm:$0xff] %vm2015_vm11, %v1990_v54  ;;  %v1974_v1 = vpop.permute.xlu0 %1973  ;;  %v2034_v39 = vld [vmem:[#allocation2 + $0x10] sm:$0xff]  ;;  %3015 = vmatprep.mubr.msk.bf16.mxu1 %vm2075_vm12, %v2042_v26 }
 0x107   : > { %2019 = vst.msk [vmem:[#allocation2 + $0x18] sm:$0xff] %vm2015_vm11, %v1974_v1  ;;  %2999 = vmatprep.mubr.msk.bf16.mxu0 %vm2075_vm12, %v2034_v39  ;;  %1884 = vrot.lane.b32.xlu1 %v1853_v31, %s3197_s26 }
 0x108   : > { %1868 = vrot.lane.b32.xlu0 %v1757_v0, %s3197_s26 }
 0x109   : > { %v656_v45 = vpop.permute.xlu1 %655 }
 0x10a   : > { %691 = vst.msk [vmem:[#allocation2 + $0x68] sm:$0xff] %vm677_vm4, %v656_v45  ;;  %v640_v34 = vpop.permute.xlu0 %639 }
 0x10b   : > { %683 = vst.msk [vmem:[#allocation2 + $0x28] sm:$0xff] %vm677_vm4, %v640_v34  ;;  %1995 = vrot.lane.b32.xlu1 %v1963_v36, %s3198_s27 }
 0x10c   : > { %1979 = vrot.lane.b32.xlu0 %v1939_v46, %s3198_s27 }
 0x10d   : > { %v768_v9 = vpop.permute.xlu1 %767  ;;  %v2043_v42 = vld [vmem:[#allocation2 + $0x58] sm:$0xff] }
 0x10e   : > { %804 = vst.msk [vmem:[#allocation2 + $0x60] sm:$0xff] %vm791_vm5, %v768_v9  ;;  %v752_v61 = vpop.permute.xlu0 %751  ;;  %v2035_v3 = vld [vmem:[#allocation2 + $0x18] sm:$0xff]  ;;  %3016 = vmatmul.mubr.msk.bf16.gmra.mrb[4].mxu1 %vm2075_vm12, %v2043_v42 }
 0x10f   : > { %796 = vst.msk [vmem:[#allocation2 + $0x20] sm:$0xff] %vm791_vm5, %v752_v61  ;;  %3000 = vmatmul.mubr.msk.bf16.gmra.mrb[4].mxu0 %vm2075_vm12, %v2035_v3  ;;  %1997 = vrot.lane.b32.xlu1 %v1966_v50, %s3198_s27 }
 0x110   : > { %1981 = vrot.lane.b32.xlu0 %v1942_v51, %s3198_s27 }
 0x111   : > { %v770_v37 = vpop.permute.xlu1 %769 }
 0x112   : > { %805 = vst.msk [vmem:[#allocation2 + $0x68] sm:$0xff] %vm791_vm5, %v770_v37  ;;  %v754_v52 = vpop.permute.xlu0 %753 }
 0x113   : > { %797 = vst.msk [vmem:[#allocation2 + $0x28] sm:$0xff] %vm791_vm5, %v754_v52 }
 0x115   : > { %v962_v20 = vpop.permute.xlu1 %961 }
 0x116   : > { %998 = vst.msk [vmem:[#allocation2 + $0x60] sm:$0xff] %vm985_vm6, %v962_v20  ;;  %v946_v40 = vpop.permute.xlu0 %945  ;;  %v4181_v20 = vld [vmem:[%s4248_s2] ss:$0 sm:$0xff] }
 0x117   : > { %990 = vst.msk [vmem:[#allocation2 + $0x20] sm:$0xff] %vm985_vm6, %v946_v40 }
 0x119   : > { %v964_v48 = vpop.permute.xlu1 %963 }
 0x11a   : > { %999 = vst.msk [vmem:[#allocation2 + $0x68] sm:$0xff] %vm985_vm6, %v964_v48  ;;  %v948_v5 = vpop.permute.xlu0 %947 }
 0x11b   : > { %991 = vst.msk [vmem:[#allocation2 + $0x28] sm:$0xff] %vm985_vm6, %v948_v5 }
 0x11d   : > { %v1267_v43 = vpop.permute.xlu1 %1266 }
 0x11e   : > { %1303 = vst.msk [vmem:[#allocation2 + $0x60] sm:$0xff] %vm1290_vm7, %v1267_v43  ;;  %v1251_v53 = vpop.permute.xlu0 %1250 }
 0x11f   : > { %1295 = vst.msk [vmem:[#allocation2 + $0x20] sm:$0xff] %vm1290_vm7, %v1251_v53 }
 0x121   : > { %v1269_v13 = vpop.permute.xlu1 %1268 }
 0x122   : > { %1304 = vst.msk [vmem:[#allocation2 + $0x68] sm:$0xff] %vm1290_vm7, %v1269_v13  ;;  %v1253_v55 = vpop.permute.xlu0 %1252 }
 0x123   : > { %1296 = vst.msk [vmem:[#allocation2 + $0x28] sm:$0xff] %vm1290_vm7, %v1253_v55 }
 0x125   : > { %v1380_v56 = vpop.permute.xlu1 %1379 }
 0x126   : > { %1416 = vst.msk [vmem:[#allocation2 + $0x60] sm:$0xff] %vm1403_vm8, %v1380_v56  ;;  %v1364_v49 = vpop.permute.xlu0 %1363 }
 0x127   : > { %1408 = vst.msk [vmem:[#allocation2 + $0x20] sm:$0xff] %vm1403_vm8, %v1364_v49 }
 0x129   : > { %v1382_v57 = vpop.permute.xlu1 %1381 }
 0x12a   : > { %1417 = vst.msk [vmem:[#allocation2 + $0x68] sm:$0xff] %vm1403_vm8, %v1382_v57  ;;  %v1366_v38 = vpop.permute.xlu0 %1365 }
 0x12b   : > { %1409 = vst.msk [vmem:[#allocation2 + $0x28] sm:$0xff] %vm1403_vm8, %v1366_v38 }
 0x12d   : > { %v1574_v58 = vpop.permute.xlu1 %1573 }
 0x12e   : > { %1610 = vst.msk [vmem:[#allocation2 + $0x60] sm:$0xff] %vm1597_vm9, %v1574_v58  ;;  %v1558_v62 = vpop.permute.xlu0 %1557 }
 0x12f   : > { %1602 = vst.msk [vmem:[#allocation2 + $0x20] sm:$0xff] %vm1597_vm9, %v1558_v62 }
 0x131   : > { %v1576_v63 = vpop.permute.xlu1 %1575 }
 0x132   : > { %1611 = vst.msk [vmem:[#allocation2 + $0x68] sm:$0xff] %vm1597_vm9, %v1576_v63  ;;  %v1560_v10 = vpop.permute.xlu0 %1559 }
 0x133   : > { %1603 = vst.msk [vmem:[#allocation2 + $0x28] sm:$0xff] %vm1597_vm9, %v1560_v10 }
 0x135   : > { %v1879_v12 = vpop.permute.xlu1 %1878 }
 0x136   : > { %1915 = vst.msk [vmem:[#allocation2 + $0x60] sm:$0xff] %vm1902_vm10, %v1879_v12  ;;  %v1863_v15 = vpop.permute.xlu0 %1862 }
 0x137   : > { %1907 = vst.msk [vmem:[#allocation2 + $0x20] sm:$0xff] %vm1902_vm10, %v1863_v15 }
 0x139   : > { %v1881_v2 = vpop.permute.xlu1 %1880 }
 0x13a   : > { %1916 = vst.msk [vmem:[#allocation2 + $0x68] sm:$0xff] %vm1902_vm10, %v1881_v2  ;;  %v1865_v4 = vpop.permute.xlu0 %1864 }
 0x13b   : > { %1908 = vst.msk [vmem:[#allocation2 + $0x28] sm:$0xff] %vm1902_vm10, %v1865_v4 }
 0x13d   : > { %v1992_v7 = vpop.permute.xlu1 %1991 }
 0x13e   : > { %2028 = vst.msk [vmem:[#allocation2 + $0x60] sm:$0xff] %vm2015_vm11, %v1992_v7  ;;  %v1976_v8 = vpop.permute.xlu0 %1975 }
 0x13f   : > { %2020 = vst.msk [vmem:[#allocation2 + $0x20] sm:$0xff] %vm2015_vm11, %v1976_v8 }
 0x141   : > { %v658_v16 = vpop.permute.xlu1 %657 }
 0x142   : > { %692 = vst.msk [vmem:[#allocation2 + $0x70] sm:$0xff] %vm677_vm4, %v658_v16  ;;  %v642_v17 = vpop.permute.xlu0 %641 }
 0x143   : > { %684 = vst.msk [vmem:[#allocation2 + $0x30] sm:$0xff] %vm677_vm4, %v642_v17 }
 0x145   : > { %v1994_v19 = vpop.permute.xlu1 %1993  ;;  %v2044_v22 = vld [vmem:[#allocation2 + $0x60] sm:$0xff] }
 0x146   : > { %2029 = vst.msk [vmem:[#allocation2 + $0x68] sm:$0xff] %vm2015_vm11, %v1994_v19  ;;  %v1978_v23 = vpop.permute.xlu0 %1977  ;;  %v2036_v24 = vld [vmem:[#allocation2 + $0x20] sm:$0xff]  ;;  %3019 = vmatprep.mubr.msk.bf16.mxu1 %vm2075_vm12, %v2044_v22 }
 0x147   : > { %2021 = vst.msk [vmem:[#allocation2 + $0x28] sm:$0xff] %vm2015_vm11, %v1978_v23  ;;  %3003 = vmatprep.mubr.msk.bf16.mxu0 %vm2075_vm12, %v2036_v24 }
 0x149   : > { %v660_v25 = vpop.permute.xlu1 %659 }
 0x14a   : > { %693 = vst.msk [vmem:[#allocation2 + $0x78] sm:$0xff] %vm677_vm4, %v660_v25  ;;  %v644_v27 = vpop.permute.xlu0 %643 }
 0x14b   : > { %685 = vst.msk [vmem:[#allocation2 + $0x38] sm:$0xff] %vm677_vm4, %v644_v27 }
 0x14d   : > { %v772_v28 = vpop.permute.xlu1 %771  ;;  %v2045_v29 = vld [vmem:[#allocation2 + $0x68] sm:$0xff] }
 0x14e   : > { %806 = vst.msk [vmem:[#allocation2 + $0x70] sm:$0xff] %vm791_vm5, %v772_v28  ;;  %v756_v30 = vpop.permute.xlu0 %755  ;;  %v2037_v14 = vld [vmem:[#allocation2 + $0x28] sm:$0xff]  ;;  %3020 = vmatmul.mubr.msk.bf16.gmra.mrb[8].mxu1 %vm2075_vm12, %v2045_v29 }
 0x14f   : > { %798 = vst.msk [vmem:[#allocation2 + $0x30] sm:$0xff] %vm791_vm5, %v756_v30  ;;  %3004 = vmatmul.mubr.msk.bf16.gmra.mrb[8].mxu0 %vm2075_vm12, %v2037_v14 }
 0x151   : > { %v774_v59 = vpop.permute.xlu1 %773 }
 0x152   : > { %807 = vst.msk [vmem:[#allocation2 + $0x78] sm:$0xff] %vm791_vm5, %v774_v59  ;;  %v758_v60 = vpop.permute.xlu0 %757 }
 0x153   : > { %799 = vst.msk [vmem:[#allocation2 + $0x38] sm:$0xff] %vm791_vm5, %v758_v60 }
 0x155   : > { %v966_v18 = vpop.permute.xlu1 %965 }
 0x156   : > { %1000 = vst.msk [vmem:[#allocation2 + $0x70] sm:$0xff] %vm985_vm6, %v966_v18  ;;  %v950_v11 = vpop.permute.xlu0 %949 }
 0x157   : > { %992 = vst.msk [vmem:[#allocation2 + $0x30] sm:$0xff] %vm985_vm6, %v950_v11 }
 0x159   : > { %v968_v31 = vpop.permute.xlu1 %967 }
 0x15a   : > { %1001 = vst.msk [vmem:[#allocation2 + $0x78] sm:$0xff] %vm985_vm6, %v968_v31  ;;  %v952_v32 = vpop.permute.xlu0 %951 }
 0x15b   : > { %993 = vst.msk [vmem:[#allocation2 + $0x38] sm:$0xff] %vm985_vm6, %v952_v32 }
 0x15d   : > { %v1271_v21 = vpop.permute.xlu1 %1270 }
 0x15e   : > { %1305 = vst.msk [vmem:[#allocation2 + $0x70] sm:$0xff] %vm1290_vm7, %v1271_v21  ;;  %v1255_v54 = vpop.permute.xlu0 %1254 }
 0x15f   : > { %1297 = vst.msk [vmem:[#allocation2 + $0x30] sm:$0xff] %vm1290_vm7, %v1255_v54 }
 0x161   : > { %v1273_v26 = vpop.permute.xlu1 %1272 }
 0x162   : > { %1306 = vst.msk [vmem:[#allocation2 + $0x78] sm:$0xff] %vm1290_vm7, %v1273_v26  ;;  %v1257_v0 = vpop.permute.xlu0 %1256 }
 0x163   : > { %1298 = vst.msk [vmem:[#allocation2 + $0x38] sm:$0xff] %vm1290_vm7, %v1257_v0 }
 0x165   : > { %v1384_v33 = vpop.permute.xlu1 %1383 }
 0x166   : > { %1418 = vst.msk [vmem:[#allocation2 + $0x70] sm:$0xff] %vm1403_vm8, %v1384_v33  ;;  %v1368_v35 = vpop.permute.xlu0 %1367 }
 0x167   : > { %1410 = vst.msk [vmem:[#allocation2 + $0x30] sm:$0xff] %vm1403_vm8, %v1368_v35 }
 0x169   : > { %v1386_v1 = vpop.permute.xlu1 %1385 }
 0x16a   : > { %1419 = vst.msk [vmem:[#allocation2 + $0x78] sm:$0xff] %vm1403_vm8, %v1386_v1  ;;  %v1370_v39 = vpop.permute.xlu0 %1369 }
 0x16b   : > { %1411 = vst.msk [vmem:[#allocation2 + $0x38] sm:$0xff] %vm1403_vm8, %v1370_v39 }
 0x16d   : > { %v1578_v36 = vpop.permute.xlu1 %1577 }
 0x16e   : > { %1612 = vst.msk [vmem:[#allocation2 + $0x70] sm:$0xff] %vm1597_vm9, %v1578_v36  ;;  %v1562_v41 = vpop.permute.xlu0 %1561 }
 0x16f   : > { %1604 = vst.msk [vmem:[#allocation2 + $0x30] sm:$0xff] %vm1597_vm9, %v1562_v41 }
 0x171   : > { %v1580_v44 = vpop.permute.xlu1 %1579 }
 0x172   : > { %1613 = vst.msk [vmem:[#allocation2 + $0x78] sm:$0xff] %vm1597_vm9, %v1580_v44  ;;  %v1564_v45 = vpop.permute.xlu0 %1563 }
 0x173   : > { %1605 = vst.msk [vmem:[#allocation2 + $0x38] sm:$0xff] %vm1597_vm9, %v1564_v45 }
 0x175   : > { %v1883_v46 = vpop.permute.xlu1 %1882 }
 0x176   : > { %1917 = vst.msk [vmem:[#allocation2 + $0x70] sm:$0xff] %vm1902_vm10, %v1883_v46  ;;  %v1867_v47 = vpop.permute.xlu0 %1866 }
 0x177   : > { %1909 = vst.msk [vmem:[#allocation2 + $0x30] sm:$0xff] %vm1902_vm10, %v1867_v47 }
 0x179   : > { %v1885_v6 = vpop.permute.xlu1 %1884 }
 0x17a   : > { %1918 = vst.msk [vmem:[#allocation2 + $0x78] sm:$0xff] %vm1902_vm10, %v1885_v6  ;;  %v1869_v34 = vpop.permute.xlu0 %1868 }
 0x17b   : > { %1910 = vst.msk [vmem:[#allocation2 + $0x38] sm:$0xff] %vm1902_vm10, %v1869_v34 }
 0x17d   : > { %v1996_v50 = vpop.permute.xlu1 %1995 }
 0x17e   : > { %2030 = vst.msk [vmem:[#allocation2 + $0x70] sm:$0xff] %vm2015_vm11, %v1996_v50  ;;  %v1980_v9 = vpop.permute.xlu0 %1979 }
 0x17f   : > { %2022 = vst.msk [vmem:[#allocation2 + $0x30] sm:$0xff] %vm2015_vm11, %v1980_v9 }
 0x181   : > { %v1998_v42 = vpop.permute.xlu1 %1997 }
 0x182   : > { %2031 = vst.msk [vmem:[#allocation2 + $0x78] sm:$0xff] %vm2015_vm11, %v1998_v42  ;;  %v1982_v51 = vpop.permute.xlu0 %1981 }
 0x183   : > { %2023 = vst.msk [vmem:[#allocation2 + $0x38] sm:$0xff] %vm2015_vm11, %v1982_v51 }
 0x185   : > { %v2046_v61 = vld [vmem:[#allocation2 + $0x70] sm:$0xff] }
 0x186   : > { %v2038_v3 = vld [vmem:[#allocation2 + $0x30] sm:$0xff]  ;;  %3023 = vmatprep.mubr.msk.bf16.mxu1 %vm2075_vm12, %v2046_v61 }
 0x187   : > { %3007 = vmatprep.mubr.msk.bf16.mxu0 %vm2075_vm12, %v2038_v3 }
 0x189   : > { %v2047_v37 = vld [vmem:[#allocation2 + $0x78] sm:$0xff] }
 0x18a   : > { %v2039_v52 = vld [vmem:[#allocation2 + $0x38] sm:$0xff]  ;;  %3024 = vmatmul.mubr.msk.bf16.gmra.mrb[12].mxu1 %vm2075_vm12, %v2047_v37 }
 0x18b   : > { %3008 = vmatmul.mubr.msk.bf16.gmra.mrb[12].mxu0 %vm2075_vm12, %v2039_v52 }
 0x1a1   : > { %v3013_v40 = vpop.f32.mrb[0].mxu1 }
 0x1a2   : > { %v2997_v48 = vpop.f32.mrb[0].mxu0  ;;  %v2235_v5 = vadd.f32 %v3013_v40, %v4181_v20  ;;  %v2226_v43 = vpop.f32.mrb[1].mxu1 }
 0x1a3   : > { %v2171_v53 = vadd.f32 %v2997_v48, %v4181_v20  ;;  %v2162_v13 = vpop.f32.mrb[1].mxu0  ;;  %v2227_v55 = vadd.f32 %v4181_v20, %v2226_v43  ;;  %v3014_v56 = vpop.f32.mrb[2].mxu1 }
 0x1a4   : > { %v2163_v49 = vadd.f32 %v4181_v20, %v2162_v13  ;;  %v2998_v57 = vpop.f32.mrb[2].mxu0  ;;  %v2238_v38 = vadd.f32 %v3014_v56, %v4181_v20  ;;  %v2229_v58 = vpop.f32.mrb[3].mxu1  ;;  %v2307_v12 = vmax.f32 %v2235_v5, 0.0 }
 0x1a5   : > { %v2174_v62 = vadd.f32 %v2998_v57, %v4181_v20  ;;  %v2165_v63 = vpop.f32.mrb[3].mxu0  ;;  %v2230_v10 = vadd.f32 %v4181_v20, %v2229_v58  ;;  %v2291_v4 = vmax.f32 %v2171_v53, 0.0  ;;  %v2305_v7 = vmax.f32 %v2227_v55, 0.0 }
 0x1a6   : > { %v2308_v15 = vmax.f32 %v2238_v38, 0.0  ;;  %v2166_v2 = vadd.f32 %v4181_v20, %v2165_v63  ;;  %v2289_v17 = vmax.f32 %v2163_v49, 0.0 }
 0x1a7   : > { %v2292_v8 = vmax.f32 %v2174_v62, 0.0  ;;  %v2306_v16 = vmax.f32 %v2230_v10, 0.0 }
 0x1a8   : > { %v2923_v19 = vpack.c.bf16 %v2308_v15, %v2307_v12  ;;  %v2290_v22 = vmax.f32 %v2166_v2, 0.0 }
 0x1a9   : > { %v2883_v23 = vpack.c.bf16 %v2292_v8, %v2291_v4  ;;  %v2918_v24 = vpack.c.bf16 %v2306_v16, %v2305_v7 }
 0x1aa   : > { %2963 = vst [vmem:[%s4195_s16 + $0x48] sm:$0xff] %v2923_v19   ;;  %v2878_v25 = vpack.c.bf16 %v2290_v22, %v2289_v17 }
 0x1ab   : > { %2955 = vst [vmem:[%s4195_s16 + $0x8] sm:$0xff] %v2883_v23   ;;  %2962 = vst [vmem:[%s4195_s16 + $0x40] sm:$0xff] %v2918_v24  }
 0x1ac   : > { %2879 = vst [vmem:[%s4195_s16] sm:$0xff] %v2878_v25  }
 0x1e1   : > { %v3017_v27 = vpop.f32.mrb[4].mxu1 }
 0x1e2   : > { %v3001_v28 = vpop.f32.mrb[4].mxu0  ;;  %v2251_v29 = vadd.f32 %v3017_v27, %v4181_v20  ;;  %v2242_v30 = vpop.f32.mrb[5].mxu1 }
 0x1e3   : > { %v2187_v14 = vadd.f32 %v3001_v28, %v4181_v20  ;;  %v2178_v59 = vpop.f32.mrb[5].mxu0  ;;  %v2243_v60 = vadd.f32 %v4181_v20, %v2242_v30  ;;  %v3018_v18 = vpop.f32.mrb[6].mxu1 }
 0x1e4   : > { %v2179_v11 = vadd.f32 %v4181_v20, %v2178_v59  ;;  %v3002_v31 = vpop.f32.mrb[6].mxu0  ;;  %v2254_v32 = vadd.f32 %v3018_v18, %v4181_v20  ;;  %v2245_v21 = vpop.f32.mrb[7].mxu1  ;;  %v2311_v33 = vmax.f32 %v2251_v29, 0.0 }
 0x1e5   : > { %v2190_v54 = vadd.f32 %v3002_v31, %v4181_v20  ;;  %v2181_v26 = vpop.f32.mrb[7].mxu0  ;;  %v2246_v0 = vadd.f32 %v4181_v20, %v2245_v21  ;;  %v2295_v39 = vmax.f32 %v2187_v14, 0.0  ;;  %v2309_v36 = vmax.f32 %v2243_v60, 0.0 }
 0x1e6   : > { %v2312_v35 = vmax.f32 %v2254_v32, 0.0  ;;  %v2182_v1 = vadd.f32 %v4181_v20, %v2181_v26  ;;  %v2293_v45 = vmax.f32 %v2179_v11, 0.0 }
 0x1e7   : > { %v2296_v41 = vmax.f32 %v2190_v54, 0.0  ;;  %v2310_v44 = vmax.f32 %v2246_v0, 0.0 }
 0x1e8   : > { %v2933_v46 = vpack.c.bf16 %v2312_v35, %v2311_v33  ;;  %v2294_v47 = vmax.f32 %v2182_v1, 0.0 }
 0x1e9   : > { %v2893_v6 = vpack.c.bf16 %v2296_v41, %v2295_v39  ;;  %v2928_v34 = vpack.c.bf16 %v2310_v44, %v2309_v36 }
 0x1ea   : > { %2965 = vst [vmem:[%s4195_s16 + $0x58] sm:$0xff] %v2933_v46   ;;  %v2888_v50 = vpack.c.bf16 %v2294_v47, %v2293_v45 }
 0x1eb   : > { %2957 = vst [vmem:[%s4195_s16 + $0x18] sm:$0xff] %v2893_v6   ;;  %2964 = vst [vmem:[%s4195_s16 + $0x50] sm:$0xff] %v2928_v34  }
 0x1ec   : > { %2956 = vst [vmem:[%s4195_s16 + $0x10] sm:$0xff] %v2888_v50  }
 0x221   : > { %v3021_v9 = vpop.f32.mrb[8].mxu1 }
 0x222   : > { %v3005_v42 = vpop.f32.mrb[8].mxu0  ;;  %v2267_v51 = vadd.f32 %v3021_v9, %v4181_v20  ;;  %v2258_v61 = vpop.f32.mrb[9].mxu1 }
 0x223   : > { %v2203_v3 = vadd.f32 %v3005_v42, %v4181_v20  ;;  %v2194_v37 = vpop.f32.mrb[9].mxu0  ;;  %v2259_v52 = vadd.f32 %v4181_v20, %v2258_v61  ;;  %v3022_v40 = vpop.f32.mrb[10].mxu1 }
 0x224   : > { %v2195_v48 = vadd.f32 %v4181_v20, %v2194_v37  ;;  %v3006_v5 = vpop.f32.mrb[10].mxu0  ;;  %v2270_v43 = vadd.f32 %v3022_v40, %v4181_v20  ;;  %v2261_v53 = vpop.f32.mrb[11].mxu1  ;;  %v2315_v49 = vmax.f32 %v2267_v51, 0.0 }
 0x225   : > { %v2206_v13 = vadd.f32 %v3006_v5, %v4181_v20  ;;  %v2197_v55 = vpop.f32.mrb[11].mxu0  ;;  %v2262_v56 = vadd.f32 %v4181_v20, %v2261_v53  ;;  %v2299_v58 = vmax.f32 %v2203_v3, 0.0  ;;  %v2313_v62 = vmax.f32 %v2259_v52, 0.0 }
 0x226   : > { %v2316_v57 = vmax.f32 %v2270_v43, 0.0  ;;  %v2198_v38 = vadd.f32 %v4181_v20, %v2197_v55  ;;  %v2297_v12 = vmax.f32 %v2195_v48, 0.0 }
 0x227   : > { %v2300_v63 = vmax.f32 %v2206_v13, 0.0  ;;  %v2314_v10 = vmax.f32 %v2262_v56, 0.0 }
 0x228   : > { %v2943_v15 = vpack.c.bf16 %v2316_v57, %v2315_v49  ;;  %v2298_v2 = vmax.f32 %v2198_v38, 0.0 }
 0x229   : > { %v2903_v4 = vpack.c.bf16 %v2300_v63, %v2299_v58  ;;  %v2938_v7 = vpack.c.bf16 %v2314_v10, %v2313_v62 }
 0x22a   : > { %2967 = vst [vmem:[%s4195_s16 + $0x68] sm:$0xff] %v2943_v15   ;;  %v2898_v8 = vpack.c.bf16 %v2298_v2, %v2297_v12 }
 0x22b   : > { %2959 = vst [vmem:[%s4195_s16 + $0x28] sm:$0xff] %v2903_v4   ;;  %2966 = vst [vmem:[%s4195_s16 + $0x60] sm:$0xff] %v2938_v7  }
 0x22c   : > { %2958 = vst [vmem:[%s4195_s16 + $0x20] sm:$0xff] %v2898_v8  }
 0x25d   : > { %v3025_v16 = vpop.f32.mrb[12].mxu1 }
 0x25e   : > { %v3009_v17 = vpop.f32.mrb[12].mxu0  ;;  %v2283_v19 = vadd.f32 %v3025_v16, %v4181_v20  ;;  %v2274_v22 = vpop.f32.mrb[13].mxu1 }
 0x25f   : > { %v2219_v23 = vadd.f32 %v3009_v17, %v4181_v20  ;;  %v2210_v24 = vpop.f32.mrb[13].mxu0  ;;  %v2275_v25 = vadd.f32 %v4181_v20, %v2274_v22  ;;  %v3026_v27 = vpop.f32.mrb[14].mxu1 }
 0x260   : > { %v2211_v28 = vadd.f32 %v4181_v20, %v2210_v24  ;;  %v3010_v29 = vpop.f32.mrb[14].mxu0  ;;  %v2286_v30 = vadd.f32 %v3026_v27, %v4181_v20  ;;  %v2277_v14 = vpop.f32.mrb[15].mxu1  ;;  %v2319_v11 = vmax.f32 %v2283_v19, 0.0 }
 0x261   : > { %v2222_v59 = vadd.f32 %v3010_v29, %v4181_v20  ;;  %v2213_v60 = vpop.f32.mrb[15].mxu0  ;;  %v2278_v18 = vadd.f32 %v4181_v20, %v2277_v14  ;;  %v2303_v21 = vmax.f32 %v2219_v23, 0.0  ;;  %v2317_v54 = vmax.f32 %v2275_v25, 0.0 }
 0x262   : > { %v2320_v31 = vmax.f32 %v2286_v30, 0.0  ;;  %v2214_v32 = vadd.f32 %v4181_v20, %v2213_v60  ;;  %v2301_v33 = vmax.f32 %v2211_v28, 0.0 }
 0x263   : > { %v2304_v26 = vmax.f32 %v2222_v59, 0.0  ;;  %v2318_v0 = vmax.f32 %v2278_v18, 0.0 }
 0x264   : > { %v2953_v35 = vpack.c.bf16 %v2320_v31, %v2319_v11  ;;  %v2302_v1 = vmax.f32 %v2214_v32, 0.0 }
 0x265   : > { %v2913_v39 = vpack.c.bf16 %v2304_v26, %v2303_v21  ;;  %v2948_v36 = vpack.c.bf16 %v2318_v0, %v2317_v54 }
 0x266   : > { %2969 = vst [vmem:[%s4195_s16 + $0x78] sm:$0xff] %v2953_v35   ;;  %v2908_v41 = vpack.c.bf16 %v2302_v1, %v2301_v33 }
 0x267   : > { %2961 = vst [vmem:[%s4195_s16 + $0x38] sm:$0xff] %v2913_v39   ;;  %2968 = vst [vmem:[%s4195_s16 + $0x70] sm:$0xff] %v2948_v36  }
 0x268   : > { %2960 = vst [vmem:[%s4195_s16 + $0x30] sm:$0xff] %v2908_v41  }
 0x269 PF: > { %s13_s14 = sadd.s32 1, %s3189_s14   ;;  %s4250_s12 = smov %s3185_s13 }
 0x26a   : > { %p10_p5 = scmp.ge.s32.totalorder %s13_s14, 4   ;;  %s4251_s13 = smov %s4253_s15 }
 0x26c   :  { %12 = sbr.rel (!%p10_p5) target bundleno = 2 (0x2), region = 74 }

</bundles_post_ra>
